<compile_context>
chip_gen: v7x
topology: tpu7x:2x2x1
jax: 0.10.0
libtpu: 0.0.40
codegen_flags: <defaults>
</compile_context>

<pallas_src>
import math

import jax
import jax.numpy as jnp
from jax.experimental import pallas as pl
from jax.experimental.pallas import tpu as pltpu

HIDDEN = 256  # fixed by the module: nn.LSTM(256, 256), zm_1 of shape (1, 256)


def _lstm_cell(gates, c):
    """PyTorch LSTM cell update from pre-activation gates (i, f, g, o order)."""
    i_g = jax.nn.sigmoid(gates[:, 0 * HIDDEN:1 * HIDDEN])
    f_g = jax.nn.sigmoid(gates[:, 1 * HIDDEN:2 * HIDDEN])
    g_g = jnp.tanh(gates[:, 2 * HIDDEN:3 * HIDDEN])
    o_g = jax.nn.sigmoid(gates[:, 3 * HIDDEN:4 * HIDDEN])
    c_new = f_g * c + i_g * g_g
    h_new = o_g * jnp.tanh(c_new)
    return h_new, c_new


def _make_prior_kernel(K, Kpad, zm_size, head_pad):
    """Builds the Pallas kernel body (K, Kpad, zm_size, head_pad are static)."""

    def kernel(zm1_ref, gates1_ref, b_lstm_ref, wcomb_hbm, wheads_hbm, bheads_ref,
               heads_out_ref, wcomb_vmem, wheads_vmem, dma_sem, z_buf):
        # Kick off the weight DMAs immediately; their latency hides behind the
        # serial LSTM rollout (the Pallas prologue only blocks on the tiny
        # VMEM-spec'd inputs: zm_1, gates1, b_lstm, b_heads ~ 10 KB).
        wheads_copy = pltpu.make_async_copy(wheads_hbm, wheads_vmem, dma_sem.at[1])
        wheads_copy.start()
        if K >= 3:
            wcomb_copy = pltpu.make_async_copy(wcomb_hbm, wcomb_vmem, dma_sem.at[0])
            wcomb_copy.start()

        # Zero the padded z scratch so padded rows produce finite (discarded) values.
        z_buf[...] = jnp.zeros_like(z_buf)

        x0 = zm1_ref[...]                                  # (1, 256) f32
        z_buf[pl.ds(0, 1), :] = x0

        if K >= 2:
            # step 1: h = c = 0 -> gates were fully precomputed (f32) in the wrapper,
            # so no W_ih stream and no matmul here.
            c = jnp.zeros((1, HIDDEN), jnp.float32)
            h, c = _lstm_cell(gates1_ref[...], c)
            z_buf[pl.ds(1, 1), :] = h

            if K >= 3:
                b = b_lstm_ref[...]                        # (1, 1024) f32 (b_ih + b_hh)
                wcomb_copy.wait()
                wcomb = wcomb_vmem[...]                    # (256, 1024) bf16
                # steps 2..K-1: x == h -> fold the two matmuls into one (W_ih + W_hh).
                # K is small & static -> fully unrolled.
                # TODO(synk): for K >> 8 on v6e/v7x, hold W_comb resident via
                # pltpu.matmul_push_rhs / matmul_acc_lhs / matmul_pop and drive the
                # loop with lax.fori_loop(unroll=True) instead of the Python unroll.
                for t in range(2, K):
                    gates = jnp.dot(h.astype(jnp.bfloat16), wcomb,
                                    preferred_element_type=jnp.float32) + b
                    h, c = _lstm_cell(gates, c)
                    z_buf[pl.ds(t, 1), :] = h

        # --- fused, lane-padded loc|scale heads: one (Kpad,256)@(256,head_pad) matmul ---
        # TODO(synk): z_buf could be kept in bf16 (skip this cast) once a bundle dump
        # confirms 1-row packed-sublane bf16 stores don't trigger a relayout.
        wheads_copy.wait()
        heads = jnp.dot(z_buf[...].astype(jnp.bfloat16), wheads_vmem[...],
                        preferred_element_type=jnp.float32) + bheads_ref[...]
        # exp() only on the scale half (columns >= zm_size), via a lane mask.
        # (Padding columns carry zero weights/bias -> exp(0)=1, discarded in XLA.)
        col = jax.lax.broadcasted_iota(jnp.int32, heads.shape, 1)
        heads_out_ref[...] = jnp.where(col >= zm_size, jnp.exp(heads), heads)

    return kernel


def prepare_params(params, zm_size):
    """One-time parameter preparation (run once per parameter update, NOT per forward).

    Returns everything the kernel streams: precomputed step-1 gates, the folded
    bf16 LSTM weight, and the fused + lane-padded head weights/bias.
    """
    head_pad = ((2 * zm_size + 127) // 128) * 128          # lane-dense head width

    zm1 = params["zm_1"].astype(jnp.float32)
    b_lstm = params["b_lstm"].astype(jnp.float32)
    # Step-1 gates in full f32 (h = c = 0): kills the 512 KB W_ih stream.
    gates1 = zm1 @ params["w_ih"].astype(jnp.float32) + b_lstm

    w_comb_bf = (params["w_ih"] + params["w_hh"]).astype(jnp.bfloat16)

    w_heads = jnp.concatenate([params["w_loc"], params["w_scale"]], axis=1)
    b_heads = jnp.concatenate([params["b_loc"], params["b_scale"]], axis=1)
    pad = head_pad - 2 * zm_size
    w_heads_bf = jnp.pad(w_heads, ((0, 0), (0, pad))).astype(jnp.bfloat16)
    b_heads_pad = jnp.pad(b_heads, ((0, 0), (0, pad))).astype(jnp.float32)

    return dict(
        zm1=zm1, gates1=gates1, b_lstm=b_lstm, w_comb_bf=w_comb_bf,
        w_heads_bf=w_heads_bf, b_heads_pad=b_heads_pad, head_pad=head_pad,
    )


def autoregressive_prior_forward(prepped, K, batch_size, zm_size):
    """Returns (loc, scale) of the prior, each of shape (K * batch_size, zm_size)."""
    Kpad = max(8, ((K + 7) // 8) * 8)
    head_pad = prepped["head_pad"]

    in_arrays = [prepped["zm1"], prepped["gates1"], prepped["b_lstm"],
                 prepped["w_comb_bf"], prepped["w_heads_bf"], prepped["b_heads_pad"]]

    def full_spec(shape):
        nd = len(shape)
        return pl.BlockSpec(shape, lambda i, _nd=nd: (0,) * _nd)

    in_specs = [
        full_spec(prepped["zm1"].shape),        # (1, 256)   f32  -> VMEM
        full_spec(prepped["gates1"].shape),     # (1, 1024)  f32  -> VMEM
        full_spec(prepped["b_lstm"].shape),     # (1, 1024)  f32  -> VMEM
        pl.BlockSpec(memory_space=pl.ANY),      # W_comb  (256, 1024) bf16, manual DMA
        pl.BlockSpec(memory_space=pl.ANY),      # W_heads (256, head_pad) bf16, manual DMA
        full_spec(prepped["b_heads_pad"].shape),
    ]
    out_specs = pl.BlockSpec((Kpad, head_pad), lambda i: (0, 0))
    out_shape = jax.ShapeDtypeStruct((Kpad, head_pad), jnp.float32)

    flops = (2 * max(K - 2, 0) * HIDDEN * 4 * HIDDEN
             + 2 * Kpad * HIDDEN * head_pad)
    transcendentals = max(K - 1, 0) * 5 * HIDDEN + Kpad * head_pad
    bytes_accessed = (sum(int(a.size) * a.dtype.itemsize for a in in_arrays)
                      + Kpad * head_pad * 4)

    heads = pl.pallas_call(
        _make_prior_kernel(K, Kpad, zm_size, head_pad),
        grid=(1,),                      # whole problem fits comfortably in VMEM (~1 MB)
        in_specs=in_specs,
        out_specs=out_specs,
        out_shape=out_shape,
        scratch_shapes=[
            pltpu.VMEM((HIDDEN, 4 * HIDDEN), jnp.bfloat16),   # W_comb landing buffer
            pltpu.VMEM((HIDDEN, head_pad), jnp.bfloat16),     # W_heads landing buffer
            pltpu.SemaphoreType.DMA((2,)),
            pltpu.VMEM((Kpad, HIDDEN), jnp.float32),          # z rows (head LHS)
        ],
        cost_estimate=pl.CostEstimate(flops=flops,
                                      transcendentals=transcendentals,
                                      bytes_accessed=bytes_accessed),
        compiler_params=pltpu.CompilerParams(dimension_semantics=("arbitrary",)),
    )(*in_arrays)

    heads = heads[:K]                               # drop sublane padding rows
    loc = heads[:, :zm_size]
    scale = heads[:, zm_size:2 * zm_size]           # drop lane padding columns

    # `.unsqueeze(1).repeat(1, B, 1).view(-1, zm)` == repeat each step B times.
    loc = jnp.repeat(loc, batch_size, axis=0)
    scale = jnp.repeat(scale, batch_size, axis=0)
    return loc, scale


def init_params(key, zm_size):
    """Deterministic synthetic parameters matching the PyTorch module's shapes."""
    ks = jax.random.split(key, 9)
    bound = 1.0 / math.sqrt(HIDDEN)  # PyTorch default init range for LSTM / Linear(256, .)

    def u(k, shape):
        return jax.random.uniform(k, shape, jnp.float32, -bound, bound)

    w_ih = u(ks[0], (HIDDEN, 4 * HIDDEN))     # transpose of torch weight_ih_l0 (4H, H)
    w_hh = u(ks[1], (HIDDEN, 4 * HIDDEN))     # transpose of torch weight_hh_l0 (4H, H)
    b_ih = u(ks[2], (1, 4 * HIDDEN))
    b_hh = u(ks[3], (1, 4 * HIDDEN))
    w_loc = u(ks[4], (HIDDEN, zm_size))       # transpose of torch Linear weight (zm, 256)
    b_loc = u(ks[5], (1, zm_size))
    w_scale = u(ks[6], (HIDDEN, zm_size))
    b_scale = u(ks[7], (1, zm_size))

    # The module initializes zm_1 to zeros; it is a *trainable* parameter, so use
    # small nonzero values here so the first-step gate precompute is exercised.
    zm_1 = 0.05 * jax.random.normal(ks[8], (1, HIDDEN), jnp.float32)

    return dict(
        zm_1=zm_1,
        w_ih=w_ih, w_hh=w_hh, b_lstm=b_ih + b_hh,
        w_loc=w_loc, b_loc=b_loc, w_scale=w_scale, b_scale=b_scale,
    )


def _mirror_reference(params, K, batch_size, zm_size):
    """Pure-JAX reference replicating the kernel's exact arithmetic
    (f32 step-1 gates, bf16 folded W_ih+W_hh recurrence, bf16 fused head)."""
    bf16 = jnp.bfloat16
    w_comb = (params["w_ih"] + params["w_hh"]).astype(bf16)
    b = params["b_lstm"]
    x0 = params["zm_1"]
    zs = [x0]
    c = jnp.zeros((1, HIDDEN), jnp.float32)
    h = x0
    for t in range(1, K):
        if t == 1:
            gates = x0 @ params["w_ih"] + b                      # full f32 (precomputed)
        else:
            gates = jnp.dot(h.astype(bf16), w_comb, preferred_element_type=jnp.float32) + b
        h, c = _lstm_cell(gates, c)
        zs.append(h)
    z = jnp.concatenate(zs, axis=0)
    w_heads = jnp.concatenate([params["w_loc"], params["w_scale"]], axis=1).astype(bf16)
    b_heads = jnp.concatenate([params["b_loc"], params["b_scale"]], axis=1)
    heads = jnp.dot(z.astype(bf16), w_heads, preferred_element_type=jnp.float32) + b_heads
    loc = heads[:, :zm_size]
    scale = jnp.exp(heads[:, zm_size:])
    return jnp.repeat(loc, batch_size, axis=0), jnp.repeat(scale, batch_size, axis=0)


def _f32_reference(params, K, batch_size, zm_size):
    """Pure-f32 reference mirroring the PyTorch forward semantics."""
    x = params["zm_1"]
    h = jnp.zeros((1, HIDDEN), jnp.float32)
    c = jnp.zeros((1, HIDDEN), jnp.float32)
    zs = [x]
    for _ in range(K - 1):
        gates = x @ params["w_ih"] + h @ params["w_hh"] + params["b_lstm"]
        h, c = _lstm_cell(gates, c)
        x = h
        zs.append(x)
    z = jnp.concatenate(zs, axis=0)
    loc = z @ params["w_loc"] + params["b_loc"]
    scale = jnp.exp(z @ params["w_scale"] + params["b_scale"])
    return jnp.repeat(loc, batch_size, axis=0), jnp.repeat(scale, batch_size, axis=0)


if __name__ == "__main__":
    # Small shapes consistent with the module: hidden fixed at 256 by the model,
    # synthetic zm_size / K / batch_size.
    zm_size = 32
    K = 5
    batch_size = 2

    params = init_params(jax.random.PRNGKey(0), zm_size)

    # One-time weight prep (reused across forwards -- not on the hot path).
    prepped = prepare_params(params, zm_size)
    prepped = jax.tree_util.tree_map(
        lambda x: jax.block_until_ready(x) if isinstance(x, jax.Array) else x, prepped)

    loc, scale = autoregressive_prior_forward(prepped, K, batch_size, zm_size)
    loc = jax.block_until_ready(loc)
    scale = jax.block_until_ready(scale)

    assert loc.shape == (K * batch_size, zm_size)
    assert scale.shape == (K * batch_size, zm_size)

    # Exact-path check (same bf16 rounding as the kernel).
    m_loc, m_scale = _mirror_reference(params, K, batch_size, zm_size)
    assert jnp.allclose(loc, m_loc, atol=2e-3, rtol=2e-3)
    assert jnp.allclose(scale, m_scale, atol=2e-3, rtol=2e-3)

    # Loose check against the full-f32 PyTorch-semantics reference.
    f_loc, f_scale = _f32_reference(params, K, batch_size, zm_size)
    assert jnp.allclose(loc, f_loc, atol=5e-2, rtol=5e-2)
    assert jnp.allclose(scale, f_scale, atol=5e-2, rtol=5e-2)

    print("KERNEL_OK")
</pallas_src>

<mosaic_0001>
module attributes {stable_mosaic.version = 11 : i64} {
  func.func @kernel(%arg0: i32, %arg1: memref<1x256xf32, #tpu.memory_space<vmem>>, %arg2: memref<1x1024xf32, #tpu.memory_space<vmem>>, %arg3: memref<1x1024xf32, #tpu.memory_space<vmem>>, %arg4: memref<256x1024xbf16, #tpu.memory_space<any>>, %arg5: memref<256x128xbf16, #tpu.memory_space<any>>, %arg6: memref<1x128xf32, #tpu.memory_space<vmem>>, %arg7: memref<8x128xf32, #tpu.memory_space<vmem>>, %arg8: memref<256x1024xbf16, #tpu.memory_space<vmem>>, %arg9: memref<256x128xbf16, #tpu.memory_space<vmem>>, %arg10: memref<2x!tpu.dma_semaphore, #tpu.memory_space<semaphore_mem>>, %arg11: memref<8x256xf32, #tpu.memory_space<vmem>>) attributes {dimension_semantics = [#tpu.dimension_semantics<arbitrary>], iteration_bounds = array<i64: 1>, scalar_prefetch = 0 : i64, scratch_operands = 4 : i64, tpu.core_type = #tpu.core_type<tc>, window_params = [{pipeline_mode = #tpu.pipeline_mode<synchronous>, transform_indices = @transform_0, window_bounds = array<i64: 1, 256>}, {pipeline_mode = #tpu.pipeline_mode<synchronous>, transform_indices = @transform_1, window_bounds = array<i64: 1, 1024>}, {pipeline_mode = #tpu.pipeline_mode<synchronous>, transform_indices = @transform_2, window_bounds = array<i64: 1, 1024>}, {}, {}, {pipeline_mode = #tpu.pipeline_mode<synchronous>, transform_indices = @transform_5, window_bounds = array<i64: 1, 128>}, {pipeline_mode = #tpu.pipeline_mode<synchronous>, transform_indices = @transform_6, window_bounds = array<i64: 8, 128>}]} {
    %c1_i32 = arith.constant 1 : i32
    %0 = tpu.memref_slice %arg10[%c1_i32] : memref<2x!tpu.dma_semaphore, #tpu.memory_space<semaphore_mem>> -> memref<1x!tpu.dma_semaphore, #tpu.memory_space<semaphore_mem>>
    %1 = tpu.memref_squeeze %0 : memref<1x!tpu.dma_semaphore, #tpu.memory_space<semaphore_mem>> -> memref<!tpu.dma_semaphore, #tpu.memory_space<semaphore_mem>>
    tpu.enqueue_dma source(%arg5 : memref<256x128xbf16, #tpu.memory_space<any>>) target(%arg9 : memref<256x128xbf16, #tpu.memory_space<vmem>>) target_semaphore(%1 : memref<!tpu.dma_semaphore, #tpu.memory_space<semaphore_mem>>)
    %c0_i32 = arith.constant 0 : i32
    %2 = tpu.memref_slice %arg10[%c0_i32] : memref<2x!tpu.dma_semaphore, #tpu.memory_space<semaphore_mem>> -> memref<1x!tpu.dma_semaphore, #tpu.memory_space<semaphore_mem>>
    %3 = tpu.memref_squeeze %2 : memref<1x!tpu.dma_semaphore, #tpu.memory_space<semaphore_mem>> -> memref<!tpu.dma_semaphore, #tpu.memory_space<semaphore_mem>>
    tpu.enqueue_dma source(%arg4 : memref<256x1024xbf16, #tpu.memory_space<any>>) target(%arg8 : memref<256x1024xbf16, #tpu.memory_space<vmem>>) target_semaphore(%3 : memref<!tpu.dma_semaphore, #tpu.memory_space<semaphore_mem>>)
    %cst = arith.constant 0.000000e+00 : f32
    %4 = vector.broadcast %cst : f32 to vector<8x256xf32>
    %c0 = arith.constant 0 : index
    %c0_0 = arith.constant 0 : index
    %5 = vector.load %arg11[%c0, %c0_0] : memref<8x256xf32, #tpu.memory_space<vmem>>, vector<8x256xf32>
    tpu.vector_store %arg11[%c0, %c0_0], %4 {strides = array<i32>} : memref<8x256xf32, #tpu.memory_space<vmem>>, vector<8x256xf32>,
    %c0_1 = arith.constant 0 : index
    %c0_2 = arith.constant 0 : index
    %6 = vector.load %arg1[%c0_1, %c0_2] : memref<1x256xf32, #tpu.memory_space<vmem>>, vector<1x256xf32>
    %c0_3 = arith.constant 0 : index
    %c0_4 = arith.constant 0 : index
    %7 = vector.load %arg11[%c0_3, %c0_4] : memref<8x256xf32, #tpu.memory_space<vmem>>, vector<1x256xf32>
    tpu.vector_store %arg11[%c0_3, %c0_4], %6 {strides = array<i32>} : memref<8x256xf32, #tpu.memory_space<vmem>>, vector<1x256xf32>,
    %cst_5 = arith.constant 0.000000e+00 : f32
    %8 = vector.broadcast %cst_5 : f32 to vector<1x256xf32>
    %c0_6 = arith.constant 0 : index
    %c0_7 = arith.constant 0 : index
    %9 = vector.load %arg2[%c0_6, %c0_7] : memref<1x1024xf32, #tpu.memory_space<vmem>>, vector<1x1024xf32>
    %10 = vector.extract_strided_slice %9 {offsets = [0, 0], sizes = [1, 256], strides = [1, 1]} : vector<1x1024xf32> to vector<1x256xf32>
    %11 = arith.negf %10 : vector<1x256xf32>
    %12 = math.exp %11 : vector<1x256xf32>
    %cst_8 = arith.constant 1.000000e+00 : f32
    %13 = vector.broadcast %cst_8 : f32 to vector<1x256xf32>
    %14 = arith.addf %13, %12 : vector<1x256xf32>
    %15 = arith.divf %13, %14 : vector<1x256xf32>
    %16 = vector.extract_strided_slice %9 {offsets = [0, 256], sizes = [1, 256], strides = [1, 1]} : vector<1x1024xf32> to vector<1x256xf32>
    %17 = arith.negf %16 : vector<1x256xf32>
    %18 = math.exp %17 : vector<1x256xf32>
    %cst_9 = arith.constant 1.000000e+00 : f32
    %19 = vector.broadcast %cst_9 : f32 to vector<1x256xf32>
    %20 = arith.addf %19, %18 : vector<1x256xf32>
    %21 = arith.divf %19, %20 : vector<1x256xf32>
    %22 = vector.extract_strided_slice %9 {offsets = [0, 512], sizes = [1, 256], strides = [1, 1]} : vector<1x1024xf32> to vector<1x256xf32>
    %23 = math.tanh %22 : vector<1x256xf32>
    %24 = vector.extract_strided_slice %9 {offsets = [0, 768], sizes = [1, 256], strides = [1, 1]} : vector<1x1024xf32> to vector<1x256xf32>
    %25 = arith.negf %24 : vector<1x256xf32>
    %26 = math.exp %25 : vector<1x256xf32>
    %cst_10 = arith.constant 1.000000e+00 : f32
    %27 = vector.broadcast %cst_10 : f32 to vector<1x256xf32>
    %28 = arith.addf %27, %26 : vector<1x256xf32>
    %29 = arith.divf %27, %28 : vector<1x256xf32>
    %30 = arith.mulf %21, %8 : vector<1x256xf32>
    %31 = arith.mulf %15, %23 : vector<1x256xf32>
    %32 = arith.addf %30, %31 : vector<1x256xf32>
    %33 = math.tanh %32 : vector<1x256xf32>
    %34 = arith.mulf %29, %33 : vector<1x256xf32>
    %c1 = arith.constant 1 : index
    %c0_11 = arith.constant 0 : index
    %35 = vector.load %arg11[%c1, %c0_11] : memref<8x256xf32, #tpu.memory_space<vmem>>, vector<1x256xf32>
    tpu.vector_store %arg11[%c1, %c0_11], %34 {strides = array<i32>} : memref<8x256xf32, #tpu.memory_space<vmem>>, vector<1x256xf32>,
    %c0_12 = arith.constant 0 : index
    %c0_13 = arith.constant 0 : index
    %36 = vector.load %arg3[%c0_12, %c0_13] : memref<1x1024xf32, #tpu.memory_space<vmem>>, vector<1x1024xf32>
    %c0_i32_14 = arith.constant 0 : i32
    %37 = tpu.memref_slice %arg10[%c0_i32_14] : memref<2x!tpu.dma_semaphore, #tpu.memory_space<semaphore_mem>> -> memref<1x!tpu.dma_semaphore, #tpu.memory_space<semaphore_mem>>
    %38 = tpu.memref_squeeze %37 : memref<1x!tpu.dma_semaphore, #tpu.memory_space<semaphore_mem>> -> memref<!tpu.dma_semaphore, #tpu.memory_space<semaphore_mem>>
    tpu.wait_dma2 semaphore(%38 : memref<!tpu.dma_semaphore, #tpu.memory_space<semaphore_mem>>) src(%arg4 : memref<256x1024xbf16, #tpu.memory_space<any>>) dst(%arg8 : memref<256x1024xbf16, #tpu.memory_space<vmem>>)
    %c0_15 = arith.constant 0 : index
    %c0_16 = arith.constant 0 : index
    %39 = vector.load %arg8[%c0_15, %c0_16] : memref<256x1024xbf16, #tpu.memory_space<vmem>>, vector<256x1024xbf16>
    %40 = arith.truncf %34 : vector<1x256xf32> to vector<1x256xbf16>
    %cst_17 = arith.constant dense<0.000000e+00> : vector<1x1024xf32>
    %41 = tpu.matmul %40, %39, %cst_17 {dimension_numbers = #tpu.dot_dimension_numbers<[1], [0], [0], [1], [0, 0, 1, 1], [], []>} : vector<1x256xbf16>, vector<256x1024xbf16>, vector<1x1024xf32> -> vector<1x1024xf32>
    %42 = arith.addf %41, %36 : vector<1x1024xf32>
    %43 = vector.extract_strided_slice %42 {offsets = [0, 0], sizes = [1, 256], strides = [1, 1]} : vector<1x1024xf32> to vector<1x256xf32>
    %44 = arith.negf %43 : vector<1x256xf32>
    %45 = math.exp %44 : vector<1x256xf32>
    %cst_18 = arith.constant 1.000000e+00 : f32
    %46 = vector.broadcast %cst_18 : f32 to vector<1x256xf32>
    %47 = arith.addf %46, %45 : vector<1x256xf32>
    %48 = arith.divf %46, %47 : vector<1x256xf32>
    %49 = vector.extract_strided_slice %42 {offsets = [0, 256], sizes = [1, 256], strides = [1, 1]} : vector<1x1024xf32> to vector<1x256xf32>
    %50 = arith.negf %49 : vector<1x256xf32>
    %51 = math.exp %50 : vector<1x256xf32>
    %cst_19 = arith.constant 1.000000e+00 : f32
    %52 = vector.broadcast %cst_19 : f32 to vector<1x256xf32>
    %53 = arith.addf %52, %51 : vector<1x256xf32>
    %54 = arith.divf %52, %53 : vector<1x256xf32>
    %55 = vector.extract_strided_slice %42 {offsets = [0, 512], sizes = [1, 256], strides = [1, 1]} : vector<1x1024xf32> to vector<1x256xf32>
    %56 = math.tanh %55 : vector<1x256xf32>
    %57 = vector.extract_strided_slice %42 {offsets = [0, 768], sizes = [1, 256], strides = [1, 1]} : vector<1x1024xf32> to vector<1x256xf32>
    %58 = arith.negf %57 : vector<1x256xf32>
    %59 = math.exp %58 : vector<1x256xf32>
    %cst_20 = arith.constant 1.000000e+00 : f32
    %60 = vector.broadcast %cst_20 : f32 to vector<1x256xf32>
    %61 = arith.addf %60, %59 : vector<1x256xf32>
    %62 = arith.divf %60, %61 : vector<1x256xf32>
    %63 = arith.mulf %54, %32 : vector<1x256xf32>
    %64 = arith.mulf %48, %56 : vector<1x256xf32>
    %65 = arith.addf %63, %64 : vector<1x256xf32>
    %66 = math.tanh %65 : vector<1x256xf32>
    %67 = arith.mulf %62, %66 : vector<1x256xf32>
    %c2 = arith.constant 2 : index
    %c0_21 = arith.constant 0 : index
    %68 = vector.load %arg11[%c2, %c0_21] : memref<8x256xf32, #tpu.memory_space<vmem>>, vector<1x256xf32>
    tpu.vector_store %arg11[%c2, %c0_21], %67 {strides = array<i32>} : memref<8x256xf32, #tpu.memory_space<vmem>>, vector<1x256xf32>,
    %69 = arith.truncf %67 : vector<1x256xf32> to vector<1x256xbf16>
    %cst_22 = arith.constant dense<0.000000e+00> : vector<1x1024xf32>
    %70 = tpu.matmul %69, %39, %cst_22 {dimension_numbers = #tpu.dot_dimension_numbers<[1], [0], [0], [1], [0, 0, 1, 1], [], []>} : vector<1x256xbf16>, vector<256x1024xbf16>, vector<1x1024xf32> -> vector<1x1024xf32>
    %71 = arith.addf %70, %36 : vector<1x1024xf32>
    %72 = vector.extract_strided_slice %71 {offsets = [0, 0], sizes = [1, 256], strides = [1, 1]} : vector<1x1024xf32> to vector<1x256xf32>
    %73 = arith.negf %72 : vector<1x256xf32>
    %74 = math.exp %73 : vector<1x256xf32>
    %cst_23 = arith.constant 1.000000e+00 : f32
    %75 = vector.broadcast %cst_23 : f32 to vector<1x256xf32>
    %76 = arith.addf %75, %74 : vector<1x256xf32>
    %77 = arith.divf %75, %76 : vector<1x256xf32>
    %78 = vector.extract_strided_slice %71 {offsets = [0, 256], sizes = [1, 256], strides = [1, 1]} : vector<1x1024xf32> to vector<1x256xf32>
    %79 = arith.negf %78 : vector<1x256xf32>
    %80 = math.exp %79 : vector<1x256xf32>
    %cst_24 = arith.constant 1.000000e+00 : f32
    %81 = vector.broadcast %cst_24 : f32 to vector<1x256xf32>
    %82 = arith.addf %81, %80 : vector<1x256xf32>
    %83 = arith.divf %81, %82 : vector<1x256xf32>
    %84 = vector.extract_strided_slice %71 {offsets = [0, 512], sizes = [1, 256], strides = [1, 1]} : vector<1x1024xf32> to vector<1x256xf32>
    %85 = math.tanh %84 : vector<1x256xf32>
    %86 = vector.extract_strided_slice %71 {offsets = [0, 768], sizes = [1, 256], strides = [1, 1]} : vector<1x1024xf32> to vector<1x256xf32>
    %87 = arith.negf %86 : vector<1x256xf32>
    %88 = math.exp %87 : vector<1x256xf32>
    %cst_25 = arith.constant 1.000000e+00 : f32
    %89 = vector.broadcast %cst_25 : f32 to vector<1x256xf32>
    %90 = arith.addf %89, %88 : vector<1x256xf32>
    %91 = arith.divf %89, %90 : vector<1x256xf32>
    %92 = arith.mulf %83, %65 : vector<1x256xf32>
    %93 = arith.mulf %77, %85 : vector<1x256xf32>
    %94 = arith.addf %92, %93 : vector<1x256xf32>
    %95 = math.tanh %94 : vector<1x256xf32>
    %96 = arith.mulf %91, %95 : vector<1x256xf32>
    %c3 = arith.constant 3 : index
    %c0_26 = arith.constant 0 : index
    %97 = vector.load %arg11[%c3, %c0_26] : memref<8x256xf32, #tpu.memory_space<vmem>>, vector<1x256xf32>
    tpu.vector_store %arg11[%c3, %c0_26], %96 {strides = array<i32>} : memref<8x256xf32, #tpu.memory_space<vmem>>, vector<1x256xf32>,
    %98 = arith.truncf %96 : vector<1x256xf32> to vector<1x256xbf16>
    %cst_27 = arith.constant dense<0.000000e+00> : vector<1x1024xf32>
    %99 = tpu.matmul %98, %39, %cst_27 {dimension_numbers = #tpu.dot_dimension_numbers<[1], [0], [0], [1], [0, 0, 1, 1], [], []>} : vector<1x256xbf16>, vector<256x1024xbf16>, vector<1x1024xf32> -> vector<1x1024xf32>
    %100 = arith.addf %99, %36 : vector<1x1024xf32>
    %101 = vector.extract_strided_slice %100 {offsets = [0, 0], sizes = [1, 256], strides = [1, 1]} : vector<1x1024xf32> to vector<1x256xf32>
    %102 = arith.negf %101 : vector<1x256xf32>
    %103 = math.exp %102 : vector<1x256xf32>
    %cst_28 = arith.constant 1.000000e+00 : f32
    %104 = vector.broadcast %cst_28 : f32 to vector<1x256xf32>
    %105 = arith.addf %104, %103 : vector<1x256xf32>
    %106 = arith.divf %104, %105 : vector<1x256xf32>
    %107 = vector.extract_strided_slice %100 {offsets = [0, 256], sizes = [1, 256], strides = [1, 1]} : vector<1x1024xf32> to vector<1x256xf32>
    %108 = arith.negf %107 : vector<1x256xf32>
    %109 = math.exp %108 : vector<1x256xf32>
    %cst_29 = arith.constant 1.000000e+00 : f32
    %110 = vector.broadcast %cst_29 : f32 to vector<1x256xf32>
    %111 = arith.addf %110, %109 : vector<1x256xf32>
    %112 = arith.divf %110, %111 : vector<1x256xf32>
    %113 = vector.extract_strided_slice %100 {offsets = [0, 512], sizes = [1, 256], strides = [1, 1]} : vector<1x1024xf32> to vector<1x256xf32>
    %114 = math.tanh %113 : vector<1x256xf32>
    %115 = vector.extract_strided_slice %100 {offsets = [0, 768], sizes = [1, 256], strides = [1, 1]} : vector<1x1024xf32> to vector<1x256xf32>
    %116 = arith.negf %115 : vector<1x256xf32>
    %117 = math.exp %116 : vector<1x256xf32>
    %cst_30 = arith.constant 1.000000e+00 : f32
    %118 = vector.broadcast %cst_30 : f32 to vector<1x256xf32>
    %119 = arith.addf %118, %117 : vector<1x256xf32>
    %120 = arith.divf %118, %119 : vector<1x256xf32>
    %121 = arith.mulf %112, %94 : vector<1x256xf32>
    %122 = arith.mulf %106, %114 : vector<1x256xf32>
    %123 = arith.addf %121, %122 : vector<1x256xf32>
    %124 = math.tanh %123 : vector<1x256xf32>
    %125 = arith.mulf %120, %124 : vector<1x256xf32>
    %c4 = arith.constant 4 : index
    %c0_31 = arith.constant 0 : index
    %126 = vector.load %arg11[%c4, %c0_31] : memref<8x256xf32, #tpu.memory_space<vmem>>, vector<1x256xf32>
    tpu.vector_store %arg11[%c4, %c0_31], %125 {strides = array<i32>} : memref<8x256xf32, #tpu.memory_space<vmem>>, vector<1x256xf32>,
    %c1_i32_32 = arith.constant 1 : i32
    %127 = tpu.memref_slice %arg10[%c1_i32_32] : memref<2x!tpu.dma_semaphore, #tpu.memory_space<semaphore_mem>> -> memref<1x!tpu.dma_semaphore, #tpu.memory_space<semaphore_mem>>
    %128 = tpu.memref_squeeze %127 : memref<1x!tpu.dma_semaphore, #tpu.memory_space<semaphore_mem>> -> memref<!tpu.dma_semaphore, #tpu.memory_space<semaphore_mem>>
    tpu.wait_dma2 semaphore(%128 : memref<!tpu.dma_semaphore, #tpu.memory_space<semaphore_mem>>) src(%arg5 : memref<256x128xbf16, #tpu.memory_space<any>>) dst(%arg9 : memref<256x128xbf16, #tpu.memory_space<vmem>>)
    %c0_33 = arith.constant 0 : index
    %c0_34 = arith.constant 0 : index
    %129 = vector.load %arg11[%c0_33, %c0_34] : memref<8x256xf32, #tpu.memory_space<vmem>>, vector<8x256xf32>
    %130 = arith.truncf %129 : vector<8x256xf32> to vector<8x256xbf16>
    %c0_35 = arith.constant 0 : index
    %c0_36 = arith.constant 0 : index
    %131 = vector.load %arg9[%c0_35, %c0_36] : memref<256x128xbf16, #tpu.memory_space<vmem>>, vector<256x128xbf16>
    %cst_37 = arith.constant dense<0.000000e+00> : vector<8x128xf32>
    %132 = tpu.matmul %130, %131, %cst_37 {dimension_numbers = #tpu.dot_dimension_numbers<[1], [0], [0], [1], [0, 0, 1, 1], [], []>} : vector<8x256xbf16>, vector<256x128xbf16>, vector<8x128xf32> -> vector<8x128xf32>
    %c0_38 = arith.constant 0 : index
    %c0_39 = arith.constant 0 : index
    %133 = vector.load %arg6[%c0_38, %c0_39] : memref<1x128xf32, #tpu.memory_space<vmem>>, vector<1x128xf32>
    %134 = vector.broadcast %133 : vector<1x128xf32> to vector<8x128xf32>
    %135 = arith.addf %132, %134 : vector<8x128xf32>
    %136 = tpu.iota {dimensions = array<i32: 1>} : vector<8x128xi32>
    %c32_i32 = arith.constant 32 : i32
    %137 = vector.broadcast %c32_i32 : i32 to vector<8x128xi32>
    %138 = arith.cmpi sge, %136, %137 : vector<8x128xi32>
    %139 = math.exp %135 : vector<8x128xf32>
    %140 = arith.select %138, %139, %135 : vector<8x128xi1>, vector<8x128xf32>
    %c0_40 = arith.constant 0 : index
    %c0_41 = arith.constant 0 : index
    %141 = vector.load %arg7[%c0_40, %c0_41] : memref<8x128xf32, #tpu.memory_space<vmem>>, vector<8x128xf32>
    tpu.vector_store %arg7[%c0_40, %c0_41], %140 {strides = array<i32>} : memref<8x128xf32, #tpu.memory_space<vmem>>, vector<8x128xf32>,
    return
  }
  func.func @transform_0(%arg0: i32) -> (i32, i32) {
    %c0_i32 = arith.constant 0 : i32
    %c0_i32_0 = arith.constant 0 : i32
    %c0_i32_1 = arith.constant 0 : i32
    return %c0_i32, %c0_i32_0 : i32, i32
  }
  func.func @transform_1(%arg0: i32) -> (i32, i32) {
    %c0_i32 = arith.constant 0 : i32
    %c0_i32_0 = arith.constant 0 : i32
    %c0_i32_1 = arith.constant 0 : i32
    return %c0_i32, %c0_i32_0 : i32, i32
  }
  func.func @transform_2(%arg0: i32) -> (i32, i32) {
    %c0_i32 = arith.constant 0 : i32
    %c0_i32_0 = arith.constant 0 : i32
    %c0_i32_1 = arith.constant 0 : i32
    return %c0_i32, %c0_i32_0 : i32, i32
  }
  func.func @transform_5(%arg0: i32) -> (i32, i32) {
    %c0_i32 = arith.constant 0 : i32
    %c0_i32_0 = arith.constant 0 : i32
    %c0_i32_1 = arith.constant 0 : i32
    return %c0_i32, %c0_i32_0 : i32, i32
  }
  func.func @transform_6(%arg0: i32) -> (i32, i32) {
    %c0_i32 = arith.constant 0 : i32
    %c0_i32_0 = arith.constant 0 : i32
    %c0_i32_1 = arith.constant 0 : i32
    return %c0_i32, %c0_i32_0 : i32, i32
  }
}

</mosaic_0001>

<bundles_post_ra>
// kernel: tpu_custom_call.1
= control target key start
LH: loop header
LB: loop body
LE: loop exit
PB: predicated region body
PF: predicated region fallthrough
CT: control target
= control target key end

     0   :  { %11 = vsyncpa [#allocation7], 0  ;;  %s2357_s0 = inlined_call_operand.hbm [shape: f32[1,256], index: 0, kind: input, shape index: {}]   ;;  %s2358_s1 = inlined_call_operand.hbm [shape: f32[1,1024], index: 1, kind: input, shape index: {}]   ;;  %s2359_s2 = inlined_call_operand.hbm [shape: f32[1,1024], index: 2, kind: input, shape index: {}]   ;;  %s2360_s3 = inlined_call_operand.hbm [shape: bf16[256,1024], index: 3, kind: input, shape index: {}]   ;;  %s2361_s4 = inlined_call_operand.hbm [shape: bf16[256,128], index: 4, kind: input, shape index: {}]   ;;  %s2362_s5 = inlined_call_operand.vmem [shape: f32[1,128], index: 5, kind: input, shape index: {}]   ;;  %s2363_s6 = inlined_call_operand.hbm [shape: f32[8,128], index: 6, kind: output, shape index: {}]  }
   0x1   :  { %12 = vsyncpa [#allocation10], 0 }
   0x2   :  { %13 = vsyncpa [#allocation8], 0  ;;  %s1461_s21 = smov [#allocation9]   ;;  %s1462_s23 = smov [#allocation6]  }
   0x3   :  { %s30_s22 = sshll.u32 %s1461_s21, 4  ;;  %s20_s24 = sshll.u32 %s1462_s23, 4  ;;  %s31_s22 = int_to_ptr.vmem [resolvable:$true] %s30_s22  ;;  %s21_s24 = int_to_ptr.vmem [resolvable:$true] %s20_s24 }
   0x4   :  { %s1341_s27 = scalar_lea.hbm %s2358_s1, 128 }
   0x5   :  { %p1342_p0 = scmp.ne.s32.totalorder %s2358_s1, %s1341_s27  ;;  %p1345_p1 = scmp.lt.u32.totalorder %s1341_s27, %s2358_s1 }
   0x7   :  { %p1347_p2 = pnand %p1345_p1, %p1342_p0 }
   0x9   :  { %1350 = shalt.err (!%p1347_p2)
}
   0xa   :  { %s1351_s8 = scalar_lea.vmem %s31_s22, 128  ;;  %p1356_p4 = scmp.lt.s32.totalorder %s31_s22, %s31_s22 }
   0xb   :  { %p1352_p3 = scmp.ne.s32.totalorder %s31_s22, %s1351_s8  ;;  %p1357_p5 = scmp.lt.s32.totalorder %s1351_s8, %s1351_s8 }
   0xd   :  { %p1358_p6 = por %p1357_p5, %p1356_p4 }
   0xf   :  { %p1359_p7 = pnand %p1358_p6, %p1352_p3 }
  0x11   :  { %1362 = shalt.err (!%p1359_p7)
}
  0x12   :  { %33 = dma.hbm_to_vmem [thread:$0]  %s2358_s1, 128, %s31_s22, [#allocation10]  }
  0x13   :  { %s1363_s13 = scalar_lea.hbm %s2357_s0, 32 }
  0x14   :  { %p1364_p8 = scmp.ne.s32.totalorder %s2357_s0, %s1363_s13  ;;  %p1367_p9 = scmp.lt.u32.totalorder %s1363_s13, %s2357_s0 }
  0x16   :  { %p1369_p10 = pnand %p1367_p9, %p1364_p8 }
  0x18   :  { %1372 = shalt.err (!%p1369_p10)
}
  0x19   :  { %s1373_s18 = scalar_lea.vmem %s21_s24, 32  ;;  %p1378_p12 = scmp.lt.s32.totalorder %s21_s24, %s21_s24 }
  0x1a   :  { %p1374_p11 = scmp.ne.s32.totalorder %s21_s24, %s1373_s18  ;;  %p1379_p13 = scmp.lt.s32.totalorder %s1373_s18, %s1373_s18 }
  0x1c   :  { %p1380_p0 = por %p1379_p13, %p1378_p12 }
  0x1e   :  { %p1381_p1 = pnand %p1380_p0, %p1374_p11 }
  0x20   :  { %1384 = shalt.err (!%p1381_p1)
}
  0x21   :  { %23 = dma.hbm_to_vmem [thread:$0]  %s2357_s0, 32, %s21_s24, [#allocation7]  }
  0x22   :  { %s1463_s20 = smov [#allocation11]   ;;  %s1385_s25 = scalar_lea.hbm %s2359_s2, 128 }
  0x23   :  { %s40_s21 = sshll.u32 %s1463_s20, 4  ;;  %p1386_p2 = scmp.ne.s32.totalorder %s2359_s2, %s1385_s25  ;;  %s41_s21 = int_to_ptr.vmem [resolvable:$true] %s40_s21 }
  0x24   :  { %p1389_p3 = scmp.lt.u32.totalorder %s1385_s25, %s2359_s2 }
  0x26   :  { %p1391_p4 = pnand %p1389_p3, %p1386_p2 }
  0x28   :  { %1394 = shalt.err (!%p1391_p4)
}
  0x29   :  { %s1395_s30 = scalar_lea.vmem %s41_s21, 128  ;;  %p1400_p6 = scmp.lt.s32.totalorder %s41_s21, %s41_s21 }
  0x2a   :  { %p1396_p5 = scmp.ne.s32.totalorder %s41_s21, %s1395_s30  ;;  %p1401_p7 = scmp.lt.s32.totalorder %s1395_s30, %s1395_s30 }
  0x2c   :  { %p1402_p8 = por %p1401_p7, %p1400_p6 }
  0x2e   :  { %p1403_p9 = pnand %p1402_p8, %p1396_p5 }
  0x30   :  { %1406 = shalt.err (!%p1403_p9)
}
  0x31   :  { %43 = dma.hbm_to_vmem [thread:$0]  %s2359_s2, 128, %s41_s21, [#allocation10]  }
  0x32   :  { %1451 = dma.done.wait [#allocation7], 32  }
  0x33   :  { %1452 = vsyncadd [#allocation7], 4294967264 }
  0x34   :  { %1453 = dma.done.wait [#allocation10], 256  }
  0x35   :  { %1454 = vsyncadd [#allocation10], 4294967040  ;;  %s72_s7 = sld [smem:[#allocation0]]   ;;  %s1464_s8 = smov 1024  }
  0x36   :  { %84 = sst [smem:[#allocation18]] %s1464_s8  ;;  %s1465_s9 = smov 8  }
  0x37   :  { %86 = sst [smem:[#allocation18 + $0x1]] %s1464_s8  ;;  %s1466_s10 = smov 64  }
  0x38   :  { %88 = sst [smem:[#allocation18 + $0x2]] %s1465_s9  ;;  %s1467_s11 = smov 128  }
  0x39   :  { %90 = sst [smem:[#allocation18 + $0x3]] %s1466_s10  ;;  %s1468_s12 = smov 2  }
  0x3a   :  { %92 = sst [smem:[#allocation18 + $0x4]] %s1467_s11  ;;  %s1469_s14 = smov 512  }
  0x3b   :  { %94 = sst [smem:[#allocation18 + $0x5]] %s1468_s12  ;;  %s1154_s13 = sshll.u32 %s72_s7, 26 }
  0x3c   :  { %96 = sst [smem:[#allocation18 + $0x6]] %s1469_s14  ;;  %s1155_s2 = sadd.s32 134217728, %s1154_s13 }
  0x3d   :  { %98 = sst [smem:[#allocation18 + $0x7]] %s1466_s10  ;;  %s1470_s15 = smov 4  }
  0x3e   :  { %100 = sst [smem:[#allocation18 + $0x8]] %s1470_s15  ;;  %s1471_s16 = smov [#allocation3]  }
  0x3f   :  { %s64_s17 = sshll.u32 %s1471_s16, 4  ;;  %s1472_s18 = smov [#allocation2]   ;;  %s65_s17 = int_to_ptr.vmem [resolvable:$true] %s64_s17 }
  0x40   :  { %s80_s1 = sshll.u32 %s1472_s18, 4  ;;  %s1407_s21 = scalar_lea.hbm %s2361_s4, 2048  ;;  %s81_s1 = int_to_ptr.vmem [resolvable:$true] %s80_s1 }
  0x41   :  { %p1408_p10 = scmp.ne.s32.totalorder %s2361_s4, %s1407_s21  ;;  %p1411_p11 = scmp.lt.u32.totalorder %s1407_s21, %s2361_s4 }
  0x43   :  { %p1413_p12 = pnand %p1411_p11, %p1408_p10 }
  0x45   :  { %1416 = shalt.err (!%p1413_p12)  }
  0x46   :  { %s1417_s27 = scalar_lea.vmem %s65_s17, 2048  ;;  %p1422_p0 = scmp.lt.s32.totalorder %s65_s17, %s65_s17 }
  0x47   :  { %p1418_p13 = scmp.ne.s32.totalorder %s65_s17, %s1417_s27  ;;  %p1423_p1 = scmp.lt.s32.totalorder %s1417_s27, %s1417_s27 }
  0x49   :  { %p1424_p2 = por %p1423_p1, %p1422_p0 }
  0x4b   :  { %p1425_p3 = pnand %p1424_p2, %p1418_p13 }
  0x4d   :  { %1428 = shalt.err (!%p1425_p3)  }
  0x4e   :  { %67 = dma.hbm_to_vmem [thread:$0]  %s2361_s4, 2048, %s65_s17, [#allocation4 + $0x1]  ;;  %v1475_v0 = vmov 0.0   ;;  %v2364_v1 = vlaneseq  ;;  %v2534_v2 = vmov 0 }
  0x4f   :  { %s1473_s30 = smov [#allocation4]   ;;  %s1474_s0 = smov [#allocation17]  }
  0x50   :  { %102 = dma.general %s2360_s3, 16384, %s81_s1, %s1473_s30, %s1474_s0, [#allocation18], %s1155_s2, 0   ;;  %vm1565_vm0 = vcmp.lt.s32.totalorder %v2364_v1, 256 }
  0x51   :  { %103 = vst [vmem:[#allocation5] sm:$0xff] %v1475_v0  ;;  %104 = vst [vmem:[#allocation5 + $0x8] sm:$0xff] %v1475_v0  ;;  %v2535_v2 = vsel %vm1565_vm0, 4294967295, %v2534_v2  ;;  %v1569_v3 = vld [vmem:[#allocation11] sm:$0xff]  ;;  %v105_v4 = vld [vmem:[#allocation6] sm:$0x3] }
  0x52   :  { %2536 = vst [vmem:[#allocation24_spill] sm:$0xff] %v2535_v2  ;;  %2537 = vst [vmem:[#allocation25_spill] sm:$0xff] %v1569_v3  ;;  %v112_v5 = vld [vmem:[#allocation9] sm:$0xff] }
  0x53   :  { %110 = vst.msk [vmem:[#allocation5] ss:$8 sm:$0x3] %vm1565_vm0, %v105_v4  ;;  %v1156_v6 = vmul.f32 -1.442695, %v112_v5  ;;  %v120_v7 = vrot.slane %v112_v5, 2 }
  0x54   :  { %v131_v9 = vrot.slane %v112_v5, 6  ;;  %v128_v10 = vrot.slane %v112_v5, 4 }
  0x55   :  { %1219 = vpow2.f32 %v1156_v6  ;;  %v1157_v8 = vmul.f32 -1.442695, %v120_v7 }
  0x56   :  { %v1158_v11 = vmul.f32 -1.442695, %v131_v9 }
  0x57   :  { %1221 = vpow2.f32 %v1157_v8 }
  0x58   :  { %1223 = vtanh.f32 %v128_v10 }
  0x59   :  { %1225 = vpow2.f32 %v1158_v11 }
  0x5f   :  { %v1220_v12 = vpop.eup %1219 }
  0x60   :  { %v116_v13 = vadd.f32 1.0, %v1220_v12 }
  0x61   :  { %v1222_v14 = vpop.eup %1221 }
  0x62   :  { %1227 = vrcp.f32 %v116_v13  ;;  %v125_v15 = vadd.f32 1.0, %v1222_v14  ;;  %v1224_v16 = vpop.eup %1223 }
  0x63   :  { %v1226_v17 = vpop.eup %1225 }
  0x64   :  { %1229 = vrcp.f32 %v125_v15  ;;  %v136_v19 = vadd.f32 1.0, %v1226_v17 }
  0x66   :  { %1231 = vrcp.f32 %v136_v19 }
  0x6c   :  { %v1228_v18 = vpop.eup %1227 }
  0x6d   :  { %v140_v20 = vmul.f32 %v1228_v18, %v1224_v16 }
  0x6e   :  { %v1230_v21 = vpop.eup %1229 }
  0x6f   :  { %v139_v22 = vmul.f32 0.0, %v1230_v21 }
  0x70   :  { %v1232_v24 = vpop.eup %1231 }
  0x71   :  { %v1573_v23 = vadd.f32 %v140_v20, %v139_v22 }
  0x73   :  { %2538 = vst [vmem:[#allocation26_spill] sm:$0xff] %v1573_v23  ;;  %1233 = vtanh.f32 %v1573_v23 }
  0x7d   :  { %v1234_v25 = vpop.eup %1233 }
  0x7e   :  { %v1576_v26 = vmul.f32 %v1234_v25, %v1232_v24 }
  0x80   :  { %145 = vst.msk [vmem:[#allocation5 + $0x1] ss:$8 sm:$0x3] %vm1565_vm0, %v1576_v26 }
  0x81   :  { %1455 = dma.done.wait [#allocation4], 16384 }
  0x82   :  { %1456 = vsyncadd [#allocation4], 4294950912  ;;  %v1582_v27 = vshrl.u32 %v2364_v1, 7  ;;  %v1589_v30 = vld [vmem:[#allocation2 + $0x8] sm:$0xff]  ;;  %v1591_v31 = vld [vmem:[#allocation2 + $0x18] sm:$0xff] }
  0x83   :  { %v1593_v32 = vld [vmem:[#allocation2] sm:$0xff]  ;;  %334 = vmatprep.subr.bf16.mxu0 %v1589_v30  ;;  %375 = vmatprep.subr.bf16.mxu1 %v1591_v31  ;;  %v1599_v34 = vld [vmem:[#allocation2 + $0x10] sm:$0xff]  ;;  %v1601_v35 = vld [vmem:[#allocation2 + $0x48] sm:$0xff] }
  0x84   :  { %2539 = vst [vmem:[#allocation27_spill] sm:$0xff] %v1582_v27  ;;  %v1585_v28 = vsub.s32 1, %v1582_v27  ;;  %v1603_v36 = vld [vmem:[#allocation2 + $0x58] sm:$0xff]  ;;  %335 = vmatpush1.bf16.msra.mxu0 %v1593_v32  ;;  %376 = vmatpush1.bf16.msra.mxu1 %v1599_v34  ;;  %v1609_v37 = vld [vmem:[#allocation2 + $0x40] sm:$0xff]  ;;  %v1611_v38 = vld [vmem:[#allocation2 + $0x50] sm:$0xff] }
  0x85   :  { %336 = vmatprep.subr.bf16.mxu0 %v1601_v35  ;;  %377 = vmatprep.subr.bf16.mxu1 %v1603_v36  ;;  %v1613_v39 = vld [vmem:[#allocation2 + $0x88] sm:$0xff]  ;;  %v1615_v40 = vld [vmem:[#allocation2 + $0x98] sm:$0xff]  ;;  %v1623_v41 = vld [vmem:[#allocation2 + $0x80] sm:$0xff] }
  0x86   :  { %2540 = vst [vmem:[#allocation28_spill] sm:$0xff] %v1585_v28  ;;  %v288_v29 = vrot.slane %v1576_v26, %v1585_v28  ;;  %v1625_v42 = vld [vmem:[#allocation2 + $0x90] sm:$0xff]  ;;  %v1627_v43 = vld [vmem:[#allocation2 + $0xc8] sm:$0xff]  ;;  %v1629_v44 = vld [vmem:[#allocation2 + $0xd8] sm:$0xff]  ;;  %v1764_v28 = vsub.s32 0, %v1582_v27 }
  0x87   :  { %v1635_v45 = vld [vmem:[#allocation2 + $0xc0] sm:$0xff]  ;;  %v1637_v46 = vld [vmem:[#allocation2 + $0xd0] sm:$0xff]  ;;  %v1639_v47 = vld [vmem:[#allocation2 + $0x108] sm:$0xff] }
  0x88   :  { %v1595_v33 = vpack.c.bf16 %v288_v29, %v288_v29  ;;  %337 = vmatpush1.bf16.msra.mxu0 %v1609_v37  ;;  %378 = vmatpush1.bf16.msra.mxu1 %v1611_v38  ;;  %v1641_v48 = vld [vmem:[#allocation2 + $0x118] sm:$0xff]  ;;  %v1647_v49 = vld [vmem:[#allocation2 + $0x100] sm:$0xff]  ;;  %v1649_v50 = vld [vmem:[#allocation2 + $0x110] sm:$0xff]  ;;  %2568 = vst [vmem:[#allocation56_spill] sm:$0xff] %v1764_v28  ;;  %v284_v27 = vrot.slane %v1576_v26, %v1764_v28 }
  0x89   :  { %338 = vmatprep.subr.bf16.mxu0 %v1613_v39  ;;  %379 = vmatprep.subr.bf16.mxu1 %v1615_v40  ;;  %v1651_v51 = vld [vmem:[#allocation2 + $0x148] sm:$0xff]  ;;  %v1653_v52 = vld [vmem:[#allocation2 + $0x158] sm:$0xff]  ;;  %v1659_v53 = vld [vmem:[#allocation2 + $0x140] sm:$0xff] }
  0x8a   :  { %366 = vmatprep.mubr.bf16.mxu0 %v1595_v33  ;;  %407 = vmatprep.mubr.bf16.mxu1 %v1595_v33  ;;  %v1661_v54 = vld [vmem:[#allocation2 + $0x150] sm:$0xff]  ;;  %v1663_v55 = vld [vmem:[#allocation2 + $0x188] sm:$0xff]  ;;  %v1665_v56 = vld [vmem:[#allocation2 + $0x198] sm:$0xff] }
  0x8b   :  { %v1671_v57 = vld [vmem:[#allocation2 + $0x180] sm:$0xff]  ;;  %v1673_v58 = vld [vmem:[#allocation2 + $0x190] sm:$0xff]  ;;  %v1675_v59 = vld [vmem:[#allocation2 + $0x1c8] sm:$0xff] }
  0x8c   :  { %339 = vmatpush1.bf16.msra.mxu0 %v1623_v41  ;;  %380 = vmatpush1.bf16.msra.mxu1 %v1625_v42  ;;  %v1677_v60 = vld [vmem:[#allocation2 + $0x1d8] sm:$0xff]  ;;  %v1683_v61 = vld [vmem:[#allocation2 + $0x1c0] sm:$0xff]  ;;  %v1685_v62 = vld [vmem:[#allocation2 + $0x1d0] sm:$0xff] }
  0x8d   :  { %340 = vmatprep.subr.bf16.mxu0 %v1627_v43  ;;  %381 = vmatprep.subr.bf16.mxu1 %v1629_v44  ;;  %2541 = vst [vmem:[#allocation29_spill] sm:$0xff] %v1685_v62  ;;  %v1687_v63 = vld [vmem:[#allocation2 + $0x208] sm:$0xff]  ;;  %v1689_v0 = vld [vmem:[#allocation2 + $0x218] sm:$0xff]  ;;  %v1695_v4 = vld [vmem:[#allocation2 + $0x200] sm:$0xff] }
  0x8e   :  { %2542 = vst [vmem:[#allocation30_spill] sm:$0xff] %v1687_v63  ;;  %2543 = vst [vmem:[#allocation31_spill] sm:$0xff] %v1689_v0  ;;  %v1697_v5 = vld [vmem:[#allocation2 + $0x210] sm:$0xff]  ;;  %v1699_v6 = vld [vmem:[#allocation2 + $0x248] sm:$0xff] }
  0x8f   :  { %2544 = vst [vmem:[#allocation32_spill] sm:$0xff] %v1695_v4  ;;  %2545 = vst [vmem:[#allocation33_spill] sm:$0xff] %v1697_v5  ;;  %v1701_v7 = vld [vmem:[#allocation2 + $0x258] sm:$0xff]  ;;  %v1707_v8 = vld [vmem:[#allocation2 + $0x240] sm:$0xff] }
  0x90   :  { %341 = vmatpush1.bf16.msra.mxu0 %v1635_v45  ;;  %382 = vmatpush1.bf16.msra.mxu1 %v1637_v46  ;;  %2546 = vst [vmem:[#allocation34_spill] sm:$0xff] %v1699_v6  ;;  %2547 = vst [vmem:[#allocation35_spill] sm:$0xff] %v1701_v7  ;;  %v1709_v9 = vld [vmem:[#allocation2 + $0x250] sm:$0xff]  ;;  %v1711_v10 = vld [vmem:[#allocation2 + $0x288] sm:$0xff] }
  0x91   :  { %342 = vmatprep.subr.bf16.mxu0 %v1639_v47  ;;  %383 = vmatprep.subr.bf16.mxu1 %v1641_v48  ;;  %2548 = vst [vmem:[#allocation36_spill] sm:$0xff] %v1707_v8  ;;  %2549 = vst [vmem:[#allocation37_spill] sm:$0xff] %v1709_v9  ;;  %v1713_v11 = vld [vmem:[#allocation2 + $0x298] sm:$0xff]  ;;  %v1719_v12 = vld [vmem:[#allocation2 + $0x280] sm:$0xff] }
  0x92   :  { %2550 = vst [vmem:[#allocation38_spill] sm:$0xff] %v1711_v10  ;;  %2551 = vst [vmem:[#allocation39_spill] sm:$0xff] %v1713_v11  ;;  %v1721_v13 = vld [vmem:[#allocation2 + $0x290] sm:$0xff]  ;;  %v1723_v14 = vld [vmem:[#allocation2 + $0x2c8] sm:$0xff] }
  0x93   :  { %2552 = vst [vmem:[#allocation40_spill] sm:$0xff] %v1719_v12  ;;  %2553 = vst [vmem:[#allocation41_spill] sm:$0xff] %v1721_v13  ;;  %v1725_v15 = vld [vmem:[#allocation2 + $0x2d8] sm:$0xff]  ;;  %v1731_v16 = vld [vmem:[#allocation2 + $0x2c0] sm:$0xff] }
  0x94   :  { %343 = vmatpush1.bf16.msra.mxu0 %v1647_v49  ;;  %384 = vmatpush1.bf16.msra.mxu1 %v1649_v50  ;;  %2554 = vst [vmem:[#allocation42_spill] sm:$0xff] %v1723_v14  ;;  %2555 = vst [vmem:[#allocation43_spill] sm:$0xff] %v1725_v15  ;;  %v1733_v17 = vld [vmem:[#allocation2 + $0x2d0] sm:$0xff]  ;;  %v1735_v18 = vld [vmem:[#allocation2 + $0x308] sm:$0xff] }
  0x95   :  { %344 = vmatprep.subr.bf16.mxu0 %v1651_v51  ;;  %385 = vmatprep.subr.bf16.mxu1 %v1653_v52  ;;  %2556 = vst [vmem:[#allocation44_spill] sm:$0xff] %v1731_v16  ;;  %2557 = vst [vmem:[#allocation45_spill] sm:$0xff] %v1733_v17  ;;  %v1737_v19 = vld [vmem:[#allocation2 + $0x318] sm:$0xff]  ;;  %v1743_v20 = vld [vmem:[#allocation2 + $0x300] sm:$0xff] }
  0x96   :  { %2558 = vst [vmem:[#allocation46_spill] sm:$0xff] %v1735_v18  ;;  %2559 = vst [vmem:[#allocation47_spill] sm:$0xff] %v1737_v19  ;;  %v1745_v21 = vld [vmem:[#allocation2 + $0x310] sm:$0xff]  ;;  %v1747_v22 = vld [vmem:[#allocation2 + $0x348] sm:$0xff] }
  0x97   :  { %2560 = vst [vmem:[#allocation48_spill] sm:$0xff] %v1743_v20  ;;  %2561 = vst [vmem:[#allocation49_spill] sm:$0xff] %v1745_v21  ;;  %v1749_v24 = vld [vmem:[#allocation2 + $0x358] sm:$0xff]  ;;  %v1755_v25 = vld [vmem:[#allocation2 + $0x340] sm:$0xff] }
  0x98   :  { %345 = vmatpush1.bf16.msra.mxu0 %v1659_v53  ;;  %386 = vmatpush1.bf16.msra.mxu1 %v1661_v54  ;;  %2562 = vst [vmem:[#allocation50_spill] sm:$0xff] %v1747_v22  ;;  %2563 = vst [vmem:[#allocation51_spill] sm:$0xff] %v1749_v24  ;;  %v1757_v29 = vld [vmem:[#allocation2 + $0x350] sm:$0xff]  ;;  %v1759_v1 = vld [vmem:[#allocation2 + $0x388] sm:$0xff] }
  0x99   :  { %346 = vmatprep.subr.bf16.mxu0 %v1663_v55  ;;  %387 = vmatprep.subr.bf16.mxu1 %v1665_v56  ;;  %2564 = vst [vmem:[#allocation52_spill] sm:$0xff] %v1755_v25  ;;  %2565 = vst [vmem:[#allocation53_spill] sm:$0xff] %v1757_v29  ;;  %v1761_v2 = vld [vmem:[#allocation2 + $0x398] sm:$0xff]  ;;  %v1770_v23 = vld [vmem:[#allocation2 + $0x380] sm:$0xff] }
  0x9a   :  { %2566 = vst [vmem:[#allocation54_spill] sm:$0xff] %v1759_v1  ;;  %2567 = vst [vmem:[#allocation55_spill] sm:$0xff] %v1761_v2  ;;  %v1772_v3 = vld [vmem:[#allocation2 + $0x390] sm:$0xff]  ;;  %v1798_v26 = vld [vmem:[#allocation2 + $0x20] sm:$0xff] }
  0x9b   :  { %2569 = vst [vmem:[#allocation57_spill] sm:$0xff] %v1770_v23  ;;  %2570 = vst [vmem:[#allocation58_spill] sm:$0xff] %v1772_v3  ;;  %v1800_v28 = vld [vmem:[#allocation2 + $0x30] sm:$0xff] }
  0x9c   :  { %347 = vmatpush1.bf16.msra.mxu0 %v1671_v57  ;;  %388 = vmatpush1.bf16.msra.mxu1 %v1673_v58  ;;  %2577 = vst [vmem:[#allocation65_spill] sm:$0xff] %v1798_v26  ;;  %2578 = vst [vmem:[#allocation66_spill] sm:$0xff] %v1800_v28 }
  0x9d   :  { %348 = vmatprep.subr.bf16.mxu0 %v1675_v59  ;;  %389 = vmatprep.subr.bf16.mxu1 %v1677_v60 }
  0xa0   :  { %349 = vmatpush1.bf16.msra.mxu0 %v1683_v61  ;;  %390 = vmatpush1.bf16.msra.mxu1 %v1685_v62 }
  0xa1   :  { %350 = vmatprep.subr.bf16.mxu0 %v1687_v63  ;;  %391 = vmatprep.subr.bf16.mxu1 %v1689_v0 }
  0xa4   :  { %351 = vmatpush1.bf16.msra.mxu0 %v1695_v4  ;;  %392 = vmatpush1.bf16.msra.mxu1 %v1697_v5 }
  0xa5   :  { %352 = vmatprep.subr.bf16.mxu0 %v1699_v6  ;;  %393 = vmatprep.subr.bf16.mxu1 %v1701_v7 }
  0xa8   :  { %353 = vmatpush1.bf16.msra.mxu0 %v1707_v8  ;;  %394 = vmatpush1.bf16.msra.mxu1 %v1709_v9 }
  0xa9   :  { %354 = vmatprep.subr.bf16.mxu0 %v1711_v10  ;;  %395 = vmatprep.subr.bf16.mxu1 %v1713_v11 }
  0xac   :  { %355 = vmatpush1.bf16.msra.mxu0 %v1719_v12  ;;  %396 = vmatpush1.bf16.msra.mxu1 %v1721_v13 }
  0xad   :  { %356 = vmatprep.subr.bf16.mxu0 %v1723_v14  ;;  %397 = vmatprep.subr.bf16.mxu1 %v1725_v15 }
  0xb0   :  { %357 = vmatpush1.bf16.msra.mxu0 %v1731_v16  ;;  %398 = vmatpush1.bf16.msra.mxu1 %v1733_v17 }
  0xb1   :  { %358 = vmatprep.subr.bf16.mxu0 %v1735_v18  ;;  %399 = vmatprep.subr.bf16.mxu1 %v1737_v19 }
  0xb4   :  { %359 = vmatpush1.bf16.msra.mxu0 %v1743_v20  ;;  %400 = vmatpush1.bf16.msra.mxu1 %v1745_v21  ;;  %v1792_v21 = vpack.c.bf16 %v284_v27, %v284_v27  ;;  %v1812_v27 = vld [vmem:[#allocation2 + $0x60] sm:$0xff] }
  0xb5   :  { %360 = vmatprep.subr.bf16.mxu0 %v1747_v22  ;;  %401 = vmatprep.subr.bf16.mxu1 %v1749_v24  ;;  %v1774_v24 = vld [vmem:[#allocation2 + $0x3c8] sm:$0xff]  ;;  %v1776_v22 = vld [vmem:[#allocation2 + $0x3d8] sm:$0xff] }
  0xb6   :  { %2571 = vst [vmem:[#allocation59_spill] sm:$0xff] %v1774_v24  ;;  %2572 = vst [vmem:[#allocation60_spill] sm:$0xff] %v1776_v22 }
  0xb8   :  { %361 = vmatpush1.bf16.msra.mxu0 %v1755_v25  ;;  %402 = vmatpush1.bf16.msra.mxu1 %v1757_v29  ;;  %v1788_v29 = vld [vmem:[#allocation2 + $0x28] sm:$0xff]  ;;  %v1790_v25 = vld [vmem:[#allocation2 + $0x38] sm:$0xff] }
  0xb9   :  { %362 = vmatprep.subr.bf16.mxu0 %v1759_v1  ;;  %403 = vmatprep.subr.bf16.mxu1 %v1761_v2  ;;  %v1784_v2 = vld [vmem:[#allocation2 + $0x3c0] sm:$0xff]  ;;  %v1786_v1 = vld [vmem:[#allocation2 + $0x3d0] sm:$0xff]  ;;  %2575 = vst [vmem:[#allocation63_spill] sm:$0xff] %v1788_v29  ;;  %2576 = vst [vmem:[#allocation64_spill] sm:$0xff] %v1790_v25 }
  0xba   :  { %2573 = vst [vmem:[#allocation61_spill] sm:$0xff] %v1784_v2  ;;  %2574 = vst [vmem:[#allocation62_spill] sm:$0xff] %v1786_v1 }
  0xbc   :  { %363 = vmatpush1.bf16.msra.mxu0 %v1770_v23  ;;  %404 = vmatpush1.bf16.msra.mxu1 %v1772_v3 }
  0xbd   :  { %364 = vmatprep.subr.bf16.mxu0 %v1774_v24  ;;  %405 = vmatprep.subr.bf16.mxu1 %v1776_v22  ;;  %v1802_v22 = vld [vmem:[#allocation2 + $0x68] sm:$0xff]  ;;  %v1804_v24 = vld [vmem:[#allocation2 + $0x78] sm:$0xff] }
  0xbe   :  { %2579 = vst [vmem:[#allocation67_spill] sm:$0xff] %v1802_v22  ;;  %2580 = vst [vmem:[#allocation68_spill] sm:$0xff] %v1804_v24 }
  0xc0   :  { %365 = vmatpush1.bf16.msra.mxu0 %v1784_v2  ;;  %406 = vmatpush1.bf16.msra.mxu1 %v1786_v1  ;;  %v1818_v1 = vld [vmem:[#allocation2 + $0xb8] sm:$0xff] }
  0xc1   :  { %416 = vmatprep.subr.bf16.mxu0 %v1788_v29  ;;  %457 = vmatprep.subr.bf16.mxu1 %v1790_v25  ;;  %v1814_v25 = vld [vmem:[#allocation2 + $0x70] sm:$0xff]  ;;  %v1816_v29 = vld [vmem:[#allocation2 + $0xa8] sm:$0xff]  ;;  %2583 = vst [vmem:[#allocation71_spill] sm:$0xff] %v1818_v1 }
  0xc2   :  { %2581 = vst [vmem:[#allocation69_spill] sm:$0xff] %v1814_v25  ;;  %2582 = vst [vmem:[#allocation70_spill] sm:$0xff] %v1816_v29 }
  0xc3   :  { %367 = vmatmul.mubr.bf16.vlgmr.msra.gmra.mrb[0].mxu0 %v1792_v21  ;;  %408 = vmatmul.mubr.bf16.vlgmr.msra.gmra.mrb[0].mxu1 %v1792_v21 }
  0xc4   :  { %417 = vmatpush1.bf16.msra.mxu0 %v1798_v26  ;;  %458 = vmatpush1.bf16.msra.mxu1 %v1800_v28  ;;  %v1830_v28 = vld [vmem:[#allocation2 + $0xe8] sm:$0xff]  ;;  %v1832_v26 = vld [vmem:[#allocation2 + $0xf8] sm:$0xff] }
  0xc5   :  { %418 = vmatprep.subr.bf16.mxu0 %v1802_v22  ;;  %459 = vmatprep.subr.bf16.mxu1 %v1804_v24  ;;  %v1826_v24 = vld [vmem:[#allocation2 + $0xa0] sm:$0xff]  ;;  %v1828_v22 = vld [vmem:[#allocation2 + $0xb0] sm:$0xff]  ;;  %2586 = vst [vmem:[#allocation74_spill] sm:$0xff] %v1830_v28  ;;  %2587 = vst [vmem:[#allocation75_spill] sm:$0xff] %v1832_v26 }
  0xc6   :  { %448 = vmatprep.mubr.bf16.mxu0 %v1595_v33  ;;  %489 = vmatprep.mubr.bf16.mxu1 %v1595_v33  ;;  %2584 = vst [vmem:[#allocation72_spill] sm:$0xff] %v1826_v24  ;;  %2585 = vst [vmem:[#allocation73_spill] sm:$0xff] %v1828_v22  ;;  %v1838_v33 = vld [vmem:[#allocation2 + $0xe0] sm:$0xff] }
  0xc7   :  { %2588 = vst [vmem:[#allocation76_spill] sm:$0xff] %v1838_v33 }
  0xc8   :  { %419 = vmatpush1.bf16.msra.mxu0 %v1812_v27  ;;  %460 = vmatpush1.bf16.msra.mxu1 %v1814_v25  ;;  %v1844_v25 = vld [vmem:[#allocation2 + $0x138] sm:$0xff] }
  0xc9   :  { %420 = vmatprep.subr.bf16.mxu0 %v1816_v29  ;;  %461 = vmatprep.subr.bf16.mxu1 %v1818_v1  ;;  %v1840_v29 = vld [vmem:[#allocation2 + $0xf0] sm:$0xff]  ;;  %v1842_v1 = vld [vmem:[#allocation2 + $0x128] sm:$0xff]  ;;  %2591 = vst [vmem:[#allocation79_spill] sm:$0xff] %v1844_v25 }
  0xca   :  { %2589 = vst [vmem:[#allocation77_spill] sm:$0xff] %v1840_v29  ;;  %2590 = vst [vmem:[#allocation78_spill] sm:$0xff] %v1842_v1 }
  0xcc   :  { %421 = vmatpush1.bf16.msra.mxu0 %v1826_v24  ;;  %462 = vmatpush1.bf16.msra.mxu1 %v1828_v22  ;;  %v1850_v22 = vld [vmem:[#allocation2 + $0x120] sm:$0xff]  ;;  %v1856_v24 = vld [vmem:[#allocation2 + $0x178] sm:$0xff] }
  0xcd   :  { %422 = vmatprep.subr.bf16.mxu0 %v1830_v28  ;;  %463 = vmatprep.subr.bf16.mxu1 %v1832_v26  ;;  %2592 = vst [vmem:[#allocation80_spill] sm:$0xff] %v1850_v22  ;;  %v1852_v28 = vld [vmem:[#allocation2 + $0x130] sm:$0xff]  ;;  %v1854_v26 = vld [vmem:[#allocation2 + $0x168] sm:$0xff]  ;;  %2595 = vst [vmem:[#allocation83_spill] sm:$0xff] %v1856_v24 }
  0xce   :  { %2593 = vst [vmem:[#allocation81_spill] sm:$0xff] %v1852_v28  ;;  %2594 = vst [vmem:[#allocation82_spill] sm:$0xff] %v1854_v26 }
  0xd0   :  { %423 = vmatpush1.bf16.msra.mxu0 %v1838_v33  ;;  %464 = vmatpush1.bf16.msra.mxu1 %v1840_v29  ;;  %v1862_v29 = vld [vmem:[#allocation2 + $0x160] sm:$0xff]  ;;  %v1868_v33 = vld [vmem:[#allocation2 + $0x1b8] sm:$0xff] }
  0xd1   :  { %424 = vmatprep.subr.bf16.mxu0 %v1842_v1  ;;  %465 = vmatprep.subr.bf16.mxu1 %v1844_v25  ;;  %2596 = vst [vmem:[#allocation84_spill] sm:$0xff] %v1862_v29  ;;  %v1864_v1 = vld [vmem:[#allocation2 + $0x170] sm:$0xff]  ;;  %v1866_v25 = vld [vmem:[#allocation2 + $0x1a8] sm:$0xff]  ;;  %2599 = vst [vmem:[#allocation87_spill] sm:$0xff] %v1868_v33 }
  0xd2   :  { %2597 = vst [vmem:[#allocation85_spill] sm:$0xff] %v1864_v1  ;;  %2598 = vst [vmem:[#allocation86_spill] sm:$0xff] %v1866_v25 }
  0xd4   :  { %425 = vmatpush1.bf16.msra.mxu0 %v1850_v22  ;;  %466 = vmatpush1.bf16.msra.mxu1 %v1852_v28  ;;  %v1874_v28 = vld [vmem:[#allocation2 + $0x1a0] sm:$0xff]  ;;  %v1880_v22 = vld [vmem:[#allocation2 + $0x1f8] sm:$0xff] }
  0xd5   :  { %426 = vmatprep.subr.bf16.mxu0 %v1854_v26  ;;  %467 = vmatprep.subr.bf16.mxu1 %v1856_v24  ;;  %2600 = vst [vmem:[#allocation88_spill] sm:$0xff] %v1874_v28  ;;  %v1876_v26 = vld [vmem:[#allocation2 + $0x1b0] sm:$0xff]  ;;  %v1878_v24 = vld [vmem:[#allocation2 + $0x1e8] sm:$0xff]  ;;  %2603 = vst [vmem:[#allocation91_spill] sm:$0xff] %v1880_v22 }
  0xd6   :  { %2601 = vst [vmem:[#allocation89_spill] sm:$0xff] %v1876_v26  ;;  %2602 = vst [vmem:[#allocation90_spill] sm:$0xff] %v1878_v24 }
  0xd8   :  { %427 = vmatpush1.bf16.msra.mxu0 %v1862_v29  ;;  %468 = vmatpush1.bf16.msra.mxu1 %v1864_v1  ;;  %v1886_v1 = vld [vmem:[#allocation2 + $0x1e0] sm:$0xff]  ;;  %v1892_v29 = vld [vmem:[#allocation2 + $0x238] sm:$0xff] }
  0xd9   :  { %428 = vmatprep.subr.bf16.mxu0 %v1866_v25  ;;  %469 = vmatprep.subr.bf16.mxu1 %v1868_v33  ;;  %2604 = vst [vmem:[#allocation92_spill] sm:$0xff] %v1886_v1  ;;  %v1888_v25 = vld [vmem:[#allocation2 + $0x1f0] sm:$0xff]  ;;  %v1890_v33 = vld [vmem:[#allocation2 + $0x228] sm:$0xff]  ;;  %2607 = vst [vmem:[#allocation95_spill] sm:$0xff] %v1892_v29 }
  0xda   :  { %2605 = vst [vmem:[#allocation93_spill] sm:$0xff] %v1888_v25  ;;  %2606 = vst [vmem:[#allocation94_spill] sm:$0xff] %v1890_v33 }
  0xdc   :  { %429 = vmatpush1.bf16.msra.mxu0 %v1874_v28  ;;  %470 = vmatpush1.bf16.msra.mxu1 %v1876_v26  ;;  %v1898_v26 = vld [vmem:[#allocation2 + $0x220] sm:$0xff]  ;;  %v1904_v28 = vld [vmem:[#allocation2 + $0x278] sm:$0xff] }
  0xdd   :  { %430 = vmatprep.subr.bf16.mxu0 %v1878_v24  ;;  %471 = vmatprep.subr.bf16.mxu1 %v1880_v22  ;;  %2608 = vst [vmem:[#allocation96_spill] sm:$0xff] %v1898_v26  ;;  %v1900_v24 = vld [vmem:[#allocation2 + $0x230] sm:$0xff]  ;;  %v1902_v22 = vld [vmem:[#allocation2 + $0x268] sm:$0xff]  ;;  %2611 = vst [vmem:[#allocation99_spill] sm:$0xff] %v1904_v28 }
  0xde   :  { %2609 = vst [vmem:[#allocation97_spill] sm:$0xff] %v1900_v24  ;;  %2610 = vst [vmem:[#allocation98_spill] sm:$0xff] %v1902_v22 }
  0xe0   :  { %431 = vmatpush1.bf16.msra.mxu0 %v1886_v1  ;;  %472 = vmatpush1.bf16.msra.mxu1 %v1888_v25  ;;  %v1910_v25 = vld [vmem:[#allocation2 + $0x260] sm:$0xff]  ;;  %v1916_v1 = vld [vmem:[#allocation2 + $0x2b8] sm:$0xff] }
  0xe1   :  { %432 = vmatprep.subr.bf16.mxu0 %v1890_v33  ;;  %473 = vmatprep.subr.bf16.mxu1 %v1892_v29  ;;  %2612 = vst [vmem:[#allocation100_spill] sm:$0xff] %v1910_v25  ;;  %v1912_v33 = vld [vmem:[#allocation2 + $0x270] sm:$0xff]  ;;  %v1914_v29 = vld [vmem:[#allocation2 + $0x2a8] sm:$0xff]  ;;  %2615 = vst [vmem:[#allocation103_spill] sm:$0xff] %v1916_v1 }
  0xe2   :  { %2613 = vst [vmem:[#allocation101_spill] sm:$0xff] %v1912_v33  ;;  %2614 = vst [vmem:[#allocation102_spill] sm:$0xff] %v1914_v29 }
  0xe4   :  { %433 = vmatpush1.bf16.msra.mxu0 %v1898_v26  ;;  %474 = vmatpush1.bf16.msra.mxu1 %v1900_v24  ;;  %v1922_v24 = vld [vmem:[#allocation2 + $0x2a0] sm:$0xff]  ;;  %v1928_v26 = vld [vmem:[#allocation2 + $0x2f8] sm:$0xff] }
  0xe5   :  { %434 = vmatprep.subr.bf16.mxu0 %v1902_v22  ;;  %475 = vmatprep.subr.bf16.mxu1 %v1904_v28  ;;  %2616 = vst [vmem:[#allocation104_spill] sm:$0xff] %v1922_v24  ;;  %v1924_v22 = vld [vmem:[#allocation2 + $0x2b0] sm:$0xff]  ;;  %v1926_v28 = vld [vmem:[#allocation2 + $0x2e8] sm:$0xff]  ;;  %2619 = vst [vmem:[#allocation107_spill] sm:$0xff] %v1928_v26 }
  0xe6   :  { %2617 = vst [vmem:[#allocation105_spill] sm:$0xff] %v1924_v22  ;;  %2618 = vst [vmem:[#allocation106_spill] sm:$0xff] %v1926_v28 }
  0xe8   :  { %435 = vmatpush1.bf16.msra.mxu0 %v1910_v25  ;;  %476 = vmatpush1.bf16.msra.mxu1 %v1912_v33  ;;  %v1934_v33 = vld [vmem:[#allocation2 + $0x2e0] sm:$0xff]  ;;  %v1940_v25 = vld [vmem:[#allocation2 + $0x338] sm:$0xff] }
  0xe9   :  { %436 = vmatprep.subr.bf16.mxu0 %v1914_v29  ;;  %477 = vmatprep.subr.bf16.mxu1 %v1916_v1  ;;  %2620 = vst [vmem:[#allocation108_spill] sm:$0xff] %v1934_v33  ;;  %v1936_v29 = vld [vmem:[#allocation2 + $0x2f0] sm:$0xff]  ;;  %v1938_v1 = vld [vmem:[#allocation2 + $0x328] sm:$0xff]  ;;  %2623 = vst [vmem:[#allocation111_spill] sm:$0xff] %v1940_v25 }
  0xea   :  { %2621 = vst [vmem:[#allocation109_spill] sm:$0xff] %v1936_v29  ;;  %2622 = vst [vmem:[#allocation110_spill] sm:$0xff] %v1938_v1 }
  0xec   :  { %437 = vmatpush1.bf16.msra.mxu0 %v1922_v24  ;;  %478 = vmatpush1.bf16.msra.mxu1 %v1924_v22  ;;  %v1946_v22 = vld [vmem:[#allocation2 + $0x320] sm:$0xff]  ;;  %v1952_v24 = vld [vmem:[#allocation2 + $0x378] sm:$0xff] }
  0xed   :  { %438 = vmatprep.subr.bf16.mxu0 %v1926_v28  ;;  %479 = vmatprep.subr.bf16.mxu1 %v1928_v26  ;;  %2624 = vst [vmem:[#allocation112_spill] sm:$0xff] %v1946_v22  ;;  %v1948_v28 = vld [vmem:[#allocation2 + $0x330] sm:$0xff]  ;;  %v1950_v26 = vld [vmem:[#allocation2 + $0x368] sm:$0xff]  ;;  %2627 = vst [vmem:[#allocation115_spill] sm:$0xff] %v1952_v24 }
  0xee   :  { %2625 = vst [vmem:[#allocation113_spill] sm:$0xff] %v1948_v28  ;;  %2626 = vst [vmem:[#allocation114_spill] sm:$0xff] %v1950_v26 }
  0xf0   :  { %439 = vmatpush1.bf16.msra.mxu0 %v1934_v33  ;;  %480 = vmatpush1.bf16.msra.mxu1 %v1936_v29  ;;  %v1958_v29 = vld [vmem:[#allocation2 + $0x360] sm:$0xff]  ;;  %v1964_v33 = vld [vmem:[#allocation2 + $0x3b8] sm:$0xff] }
  0xf1   :  { %440 = vmatprep.subr.bf16.mxu0 %v1938_v1  ;;  %481 = vmatprep.subr.bf16.mxu1 %v1940_v25  ;;  %v1960_v1 = vld [vmem:[#allocation2 + $0x370] sm:$0xff]  ;;  %v1962_v25 = vld [vmem:[#allocation2 + $0x3a8] sm:$0xff] }
  0xf2   :  { %2628 = vst [vmem:[#allocation116_spill] sm:$0xff] %v1960_v1  ;;  %2629 = vst [vmem:[#allocation117_spill] sm:$0xff] %v1962_v25 }
  0xf4   :  { %441 = vmatpush1.bf16.msra.mxu0 %v1946_v22  ;;  %482 = vmatpush1.bf16.msra.mxu1 %v1948_v28  ;;  %v1970_v28 = vld [vmem:[#allocation2 + $0x3a0] sm:$0xff]  ;;  %v1976_v22 = vld [vmem:[#allocation2 + $0x3f8] sm:$0xff] }
  0xf5   :  { %442 = vmatprep.subr.bf16.mxu0 %v1950_v26  ;;  %483 = vmatprep.subr.bf16.mxu1 %v1952_v24  ;;  %v1972_v26 = vld [vmem:[#allocation2 + $0x3b0] sm:$0xff]  ;;  %v1974_v24 = vld [vmem:[#allocation2 + $0x3e8] sm:$0xff] }
  0xf8   :  { %443 = vmatpush1.bf16.msra.mxu0 %v1958_v29  ;;  %484 = vmatpush1.bf16.msra.mxu1 %v1960_v1  ;;  %v1982_v1 = vld [vmem:[#allocation2 + $0x3e0] sm:$0xff] }
  0xf9   :  { %444 = vmatprep.subr.bf16.mxu0 %v1962_v25  ;;  %485 = vmatprep.subr.bf16.mxu1 %v1964_v33  ;;  %v1984_v25 = vld [vmem:[#allocation2 + $0x3f0] sm:$0xff] }
  0xfc   :  { %445 = vmatpush1.bf16.msra.mxu0 %v1970_v28  ;;  %486 = vmatpush1.bf16.msra.mxu1 %v1972_v26 }
  0xfd   :  { %446 = vmatprep.subr.bf16.mxu0 %v1974_v24  ;;  %487 = vmatprep.subr.bf16.mxu1 %v1976_v22 }
 0x100   :  { %447 = vmatpush1.bf16.msra.mxu0 %v1982_v1  ;;  %488 = vmatpush1.bf16.msra.mxu1 %v1984_v25 }
 0x101   :  { %580 = vmatprep.subr.bf16.mxu0 %v1589_v30  ;;  %621 = vmatprep.subr.bf16.mxu1 %v1591_v31 }
 0x103   :  { %449 = vmatmul.mubr.bf16.vlgmr.msra.gmra.mrb[4].mxu0 %v1792_v21  ;;  %490 = vmatmul.mubr.bf16.vlgmr.msra.gmra.mrb[4].mxu1 %v1792_v21  ;;  %v2630_v21 = vld [vmem:[#allocation49_spill] sm:$0xff] }
 0x104   :  { %581 = vmatpush1.bf16.msra.mxu0 %v1593_v32  ;;  %622 = vmatpush1.bf16.msra.mxu1 %v1599_v34 }
 0x105   :  { %582 = vmatprep.subr.bf16.mxu0 %v1601_v35  ;;  %623 = vmatprep.subr.bf16.mxu1 %v1603_v36 }
 0x108   :  { %583 = vmatpush1.bf16.msra.mxu0 %v1609_v37  ;;  %624 = vmatpush1.bf16.msra.mxu1 %v1611_v38 }
 0x109   :  { %584 = vmatprep.subr.bf16.mxu0 %v1613_v39  ;;  %625 = vmatprep.subr.bf16.mxu1 %v1615_v40 }
 0x10c   :  { %585 = vmatpush1.bf16.msra.mxu0 %v1623_v41  ;;  %626 = vmatpush1.bf16.msra.mxu1 %v1625_v42 }
 0x10d   :  { %586 = vmatprep.subr.bf16.mxu0 %v1627_v43  ;;  %627 = vmatprep.subr.bf16.mxu1 %v1629_v44 }
 0x110   :  { %587 = vmatpush1.bf16.msra.mxu0 %v1635_v45  ;;  %628 = vmatpush1.bf16.msra.mxu1 %v1637_v46 }
 0x111   :  { %588 = vmatprep.subr.bf16.mxu0 %v1639_v47  ;;  %629 = vmatprep.subr.bf16.mxu1 %v1641_v48 }
 0x114   :  { %589 = vmatpush1.bf16.msra.mxu0 %v1647_v49  ;;  %630 = vmatpush1.bf16.msra.mxu1 %v1649_v50 }
 0x115   :  { %590 = vmatprep.subr.bf16.mxu0 %v1651_v51  ;;  %631 = vmatprep.subr.bf16.mxu1 %v1653_v52 }
 0x118   :  { %591 = vmatpush1.bf16.msra.mxu0 %v1659_v53  ;;  %632 = vmatpush1.bf16.msra.mxu1 %v1661_v54 }
 0x119   :  { %592 = vmatprep.subr.bf16.mxu0 %v1663_v55  ;;  %633 = vmatprep.subr.bf16.mxu1 %v1665_v56 }
 0x11c   :  { %593 = vmatpush1.bf16.msra.mxu0 %v1671_v57  ;;  %634 = vmatpush1.bf16.msra.mxu1 %v1673_v58 }
 0x11d   :  { %594 = vmatprep.subr.bf16.mxu0 %v1675_v59  ;;  %635 = vmatprep.subr.bf16.mxu1 %v1677_v60 }
 0x120   :  { %595 = vmatpush1.bf16.msra.mxu0 %v1683_v61  ;;  %636 = vmatpush1.bf16.msra.mxu1 %v1685_v62 }
 0x121   :  { %596 = vmatprep.subr.bf16.mxu0 %v1687_v63  ;;  %637 = vmatprep.subr.bf16.mxu1 %v1689_v0 }
 0x124   :  { %597 = vmatpush1.bf16.msra.mxu0 %v1695_v4  ;;  %638 = vmatpush1.bf16.msra.mxu1 %v1697_v5 }
 0x125   :  { %598 = vmatprep.subr.bf16.mxu0 %v1699_v6  ;;  %639 = vmatprep.subr.bf16.mxu1 %v1701_v7  ;;  %v2646_v7 = vld [vmem:[#allocation26_spill] sm:$0xff] }
 0x128   :  { %599 = vmatpush1.bf16.msra.mxu0 %v1707_v8  ;;  %640 = vmatpush1.bf16.msra.mxu1 %v1709_v9 }
 0x129   :  { %600 = vmatprep.subr.bf16.mxu0 %v1711_v10  ;;  %641 = vmatprep.subr.bf16.mxu1 %v1713_v11  ;;  %v2631_v11 = vld [vmem:[#allocation50_spill] sm:$0xff] }
 0x12c   :  { %601 = vmatpush1.bf16.msra.mxu0 %v1719_v12  ;;  %642 = vmatpush1.bf16.msra.mxu1 %v1721_v13  ;;  %v2632_v12 = vld [vmem:[#allocation51_spill] sm:$0xff]  ;;  %v2633_v13 = vld [vmem:[#allocation52_spill] sm:$0xff] }
 0x12d   :  { %602 = vmatprep.subr.bf16.mxu0 %v1723_v14  ;;  %643 = vmatprep.subr.bf16.mxu1 %v1725_v15  ;;  %v2634_v14 = vld [vmem:[#allocation53_spill] sm:$0xff]  ;;  %v2635_v15 = vld [vmem:[#allocation54_spill] sm:$0xff] }
 0x130   :  { %603 = vmatpush1.bf16.msra.mxu0 %v1731_v16  ;;  %644 = vmatpush1.bf16.msra.mxu1 %v1733_v17  ;;  %v2636_v16 = vld [vmem:[#allocation55_spill] sm:$0xff] }
 0x131   :  { %604 = vmatprep.subr.bf16.mxu0 %v1735_v18  ;;  %645 = vmatprep.subr.bf16.mxu1 %v1737_v19  ;;  %v2637_v19 = vld [vmem:[#allocation59_spill] sm:$0xff] }
 0x134   :  { %605 = vmatpush1.bf16.msra.mxu0 %v1743_v20  ;;  %646 = vmatpush1.bf16.msra.mxu1 %v2630_v21  ;;  %v2638_v20 = vld [vmem:[#allocation60_spill] sm:$0xff]  ;;  %v2643_v21 = vld [vmem:[#allocation25_spill] sm:$0xff] }
 0x135   :  { %606 = vmatprep.subr.bf16.mxu0 %v2631_v11  ;;  %647 = vmatprep.subr.bf16.mxu1 %v2632_v12  ;;  %v2639_v11 = vld [vmem:[#allocation62_spill] sm:$0xff]  ;;  %v2640_v12 = vld [vmem:[#allocation63_spill] sm:$0xff] }
 0x138   :  { %607 = vmatpush1.bf16.msra.mxu0 %v2633_v13  ;;  %648 = vmatpush1.bf16.msra.mxu1 %v2634_v14  ;;  %v2641_v13 = vld [vmem:[#allocation64_spill] sm:$0xff]  ;;  %v2642_v14 = vld [vmem:[#allocation27_spill] sm:$0xff] }
 0x139   :  { %608 = vmatprep.subr.bf16.mxu0 %v2635_v15  ;;  %649 = vmatprep.subr.bf16.mxu1 %v2636_v16  ;;  %v304_v15 = vsub.s32 2, %v2642_v14  ;;  %v308_v4 = vsub.s32 3, %v2642_v14 }
 0x13b   :  { %v2058_v16 = vrot.slane %v2643_v21, %v304_v15 }
 0x13c   :  { %609 = vmatpush1.bf16.msra.mxu0 %v1770_v23  ;;  %650 = vmatpush1.bf16.msra.mxu1 %v1772_v3 }
 0x13d   :  { %610 = vmatprep.subr.bf16.mxu0 %v2637_v19  ;;  %651 = vmatprep.subr.bf16.mxu1 %v2638_v20  ;;  %2644 = vst [vmem:[#allocation27_spill] sm:$0xff] %v2058_v16 }
 0x140   :  { %611 = vmatpush1.bf16.msra.mxu0 %v1784_v2  ;;  %652 = vmatpush1.bf16.msra.mxu1 %v2639_v11 }
 0x141   :  { %662 = vmatprep.subr.bf16.mxu0 %v2640_v12  ;;  %703 = vmatprep.subr.bf16.mxu1 %v2641_v13  ;;  %v2645_v13 = vld [vmem:[#allocation56_spill] sm:$0xff] }
 0x142   :  { %v540_v6 = vrot.slane %v2646_v7, %v2645_v13 }
 0x196   :  { %v368_v23 = vpop.f32.mrb[0].mxu0  ;;  %v409_v18 = vpop.f32.mrb[0].mxu1 }
 0x197   :  { %v410_v3 = vadd.f32 %v409_v18, %v2058_v16  ;;  %v370_v19 = vpop.f32.mrb[1].mxu0  ;;  %v411_v17 = vpop.f32.mrb[1].mxu1  ;;  %v2066_v18 = vrot.slane %v2643_v21, %v2645_v13  ;;  %v320_v16 = vsub.s32 6, %v2642_v14 }
 0x198   :  { %v372_v20 = vpop.f32.mrb[2].mxu0  ;;  %v413_v10 = vpop.f32.mrb[2].mxu1 }
 0x199   :  { %v1161_v2 = vmul.f32 -1.442695, %v410_v3  ;;  %v373_v9 = vpop.f32.mrb[3].mxu0  ;;  %v414_v11 = vpop.f32.mrb[3].mxu1  ;;  %2647 = vst [vmem:[#allocation25_spill] sm:$0xff] %v2066_v18  ;;  %v2648_v20 = vld [vmem:[#allocation28_spill] sm:$0xff] }
 0x19a   :  { %v2070_v3 = vrot.slane %v2643_v21, %v2648_v20 }
 0x19b   :  { %1235 = vpow2.f32 %v1161_v2  ;;  %v2073_v2 = vrot.slane %v2643_v21, %v308_v4  ;;  %v316_v4 = vsub.s32 5, %v2642_v14 }
 0x19c   :  { %2649 = vst [vmem:[#allocation56_spill] sm:$0xff] %v2070_v3  ;;  %v371_v9 = vadd.f32 %v370_v19, %v2070_v3 }
 0x19d   :  { %2650 = vst [vmem:[#allocation26_spill] sm:$0xff] %v2073_v2  ;;  %v412_v10 = vadd.f32 %v411_v17, %v2073_v2 }
 0x19e   :  { %v1160_v11 = vmul.f32 -1.442695, %v371_v9 }
 0x1a5   :  { %v1236_v12 = vpop.eup %1235 }
 0x1a6   :  { %v516_v8 = vadd.f32 1.0, %v1236_v12  ;;  %v1162_v12 = vmul.f32 -1.442695, %v412_v10  ;;  %v2089_v10 = vrot.slane %v2643_v21, %v316_v4 }
 0x1a8   :  { %1237 = vrcp.f32 %v516_v8  ;;  %v369_v8 = vadd.f32 %v368_v23, %v2066_v18  ;;  %v324_v23 = vsub.s32 7, %v2642_v14  ;;  %2652 = vst [vmem:[#allocation118_spill] sm:$0xff] %v2089_v10 }
 0x1b2   :  { %v1238_v15 = vpop.eup %1237 }
 0x1b3   :  { %v547_v5 = vmul.f32 %v1238_v15, %v540_v6  ;;  %v1159_v6 = vmul.f32 -1.442695, %v369_v8  ;;  %v312_v15 = vsub.s32 4, %v2642_v14  ;;  %v2086_v8 = vrot.slane %v2643_v21, %v320_v16 }
 0x1b5   :  { %1239 = vpow2.f32 %v1159_v6  ;;  %v2083_v17 = vrot.slane %v2643_v21, %v312_v15  ;;  %2651 = vst [vmem:[#allocation28_spill] sm:$0xff] %v2086_v8  ;;  %v2092_v6 = vrot.slane %v2643_v21, %v324_v23 }
 0x1b6   :  { %1241 = vpow2.f32 %v1160_v11 }
 0x1b7   :  { %1243 = vpow2.f32 %v1162_v12 }
 0x1bf   :  { %v1240_v13 = vpop.eup %1239 }
 0x1c0   :  { %v1242_v0 = vpop.eup %1241  ;;  %v504_v19 = vadd.f32 1.0, %v1240_v13 }
 0x1c1   :  { %v1244_v18 = vpop.eup %1243  ;;  %v505_v3 = vadd.f32 1.0, %v1242_v0 }
 0x1c2   :  { %v517_v9 = vadd.f32 1.0, %v1244_v18  ;;  %1245 = vrcp.f32 %v504_v19 }
 0x1c3   :  { %1247 = vrcp.f32 %v505_v3 }
 0x1c4   :  { %1249 = vrcp.f32 %v517_v9 }
 0x1cc   :  { %v1246_v3 = vpop.eup %1245 }
 0x1d6   :  { %v450_v11 = vpop.f32.mrb[4].mxu0  ;;  %v491_v12 = vpop.f32.mrb[4].mxu1 }
 0x1d7   :  { %v451_v13 = vadd.f32 %v450_v11, %v2083_v17  ;;  %v492_v0 = vadd.f32 %v491_v12, %v2086_v8  ;;  %v452_v15 = vpop.f32.mrb[5].mxu0  ;;  %v493_v2 = vpop.f32.mrb[5].mxu1  ;;  %v544_v12 = vrot.slane %v2646_v7, %v2648_v20 }
 0x1d8   :  { %v453_v16 = vadd.f32 %v452_v15, %v2089_v10  ;;  %v494_v18 = vadd.f32 %v493_v2, %v2092_v6  ;;  %v454_v4 = vpop.f32.mrb[6].mxu0  ;;  %v495_v63 = vpop.f32.mrb[6].mxu1 }
 0x1d9   :  { %1251 = vtanh.f32 %v451_v13  ;;  %v1163_v21 = vmul.f32 -1.442695, %v492_v0  ;;  %v455_v23 = vpop.f32.mrb[7].mxu0  ;;  %v496_v19 = vpop.f32.mrb[7].mxu1 }
 0x1da   :  { %1253 = vtanh.f32 %v453_v16  ;;  %v1164_v62 = vmul.f32 -1.442695, %v494_v18  ;;  %v1248_v11 = vpop.eup %1247 }
 0x1db   :  { %1255 = vpow2.f32 %v1163_v21  ;;  %v1250_v9 = vpop.eup %1249 }
 0x1dc   :  { %1257 = vpow2.f32 %v1164_v62  ;;  %v548_v4 = vmul.f32 %v1250_v9, %v544_v12  ;;  %v1476_v62 = vmov 1966171168  }
 0x1dd   :  { %v561_v7 = vunpack.c.l.s4 %v1476_v62  ;;  %v2658_v62 = vld [vmem:[#allocation69_spill] sm:$0xff] }
 0x1e3   :  { %v1252_v8 = vpop.eup %1251 }
 0x1e4   :  { %v1254_v15 = vpop.eup %1253  ;;  %v549_v10 = vmul.f32 %v1252_v8, %v1246_v3  ;;  %v562_v8 = vunpack.c.0.s8 %v561_v7  ;;  %v2659_v7 = vld [vmem:[#allocation70_spill] sm:$0xff] }
 0x1e5   :  { %v1256_v2 = vpop.eup %1255  ;;  %v550_v63 = vmul.f32 %v1254_v15, %v1248_v11 }
 0x1e6   :  { %v1258_v13 = vpop.eup %1257  ;;  %v2100_v0 = vadd.f32 %v549_v10, %v547_v5  ;;  %v530_v23 = vadd.f32 1.0, %v1256_v2  ;;  %v2107_v10 = vsub.s32 %v562_v8, %v2642_v14  ;;  %v2661_v8 = vld [vmem:[#allocation72_spill] sm:$0xff] }
 0x1e7   :  { %v2102_v16 = vadd.f32 %v550_v63, %v548_v4  ;;  %v531_v18 = vadd.f32 1.0, %v1258_v13  ;;  %v2653_v63 = vld [vmem:[#allocation65_spill] sm:$0xff]  ;;  %v2654_v13 = vld [vmem:[#allocation66_spill] sm:$0xff] }
 0x1e8   :  { %1259 = vtanh.f32 %v2100_v0 }
 0x1e9   :  { %1261 = vrcp.f32 %v530_v23  ;;  %v2656_v23 = vld [vmem:[#allocation67_spill] sm:$0xff] }
 0x1ea   :  { %1263 = vtanh.f32 %v2102_v16 }
 0x1eb   :  { %1265 = vrcp.f32 %v531_v18  ;;  %v2657_v18 = vld [vmem:[#allocation68_spill] sm:$0xff] }
 0x1f2   :  { %v1260_v20 = vpop.eup %1259 }
 0x1f3   :  { %v1262_v21 = vpop.eup %1261 }
 0x1f4   :  { %v1264_v19 = vpop.eup %1263  ;;  %v555_v3 = vmul.f32 %v1262_v21, %v1260_v20  ;;  %v2660_v20 = vld [vmem:[#allocation71_spill] sm:$0xff]  ;;  %v2662_v21 = vld [vmem:[#allocation73_spill] sm:$0xff] }
 0x1f5   :  { %v1266_v11 = vpop.eup %1265 }
 0x1f6   :  { %v556_v5 = vmul.f32 %v1266_v11, %v1264_v19  ;;  %v2109_v15 = vpack.c.bf16 %v555_v3, %v555_v3  ;;  %v2663_v19 = vld [vmem:[#allocation74_spill] sm:$0xff]  ;;  %v2665_v11 = vld [vmem:[#allocation76_spill] sm:$0xff] }
 0x1f8   :  { %v579_v12 = vpack.c.bf16 %v556_v5, %v556_v5  ;;  %v559_v9 = vcombine.low %v555_v3, %v556_v5  ;;  %v2664_v3 = vld [vmem:[#allocation75_spill] sm:$0xff]  ;;  %v2666_v5 = vld [vmem:[#allocation77_spill] sm:$0xff] }
 0x1fa   :  { %612 = vmatprep.mubr.bf16.mxu0 %v579_v12  ;;  %653 = vmatprep.mubr.bf16.mxu1 %v579_v12  ;;  %v566_v2 = vrot.slane %v559_v9, %v2107_v10  ;;  %v2669_v9 = vld [vmem:[#allocation80_spill] sm:$0xff] }
 0x1fb   :  { %613 = vmatmul.mubr.bf16.vlgmr.msra.gmra.mrb[8].mxu0 %v2109_v15  ;;  %654 = vmatmul.mubr.bf16.vlgmr.msra.gmra.mrb[8].mxu1 %v2109_v15 }
 0x1fc   :  { %v573_v4 = vrot.slane %v566_v2, %v2107_v10  ;;  %663 = vmatpush1.bf16.msra.mxu0 %v2653_v63  ;;  %704 = vmatpush1.bf16.msra.mxu1 %v2654_v13  ;;  %v2670_v2 = vld [vmem:[#allocation81_spill] sm:$0xff]  ;;  %v2672_v63 = vld [vmem:[#allocation83_spill] sm:$0xff]  ;;  %v2673_v13 = vld [vmem:[#allocation84_spill] sm:$0xff] }
 0x1fd   :  { %694 = vmatprep.mubr.bf16.mxu0 %v579_v12  ;;  %735 = vmatprep.mubr.bf16.mxu1 %v579_v12  ;;  %v2667_v12 = vld [vmem:[#allocation78_spill] sm:$0xff] }
 0x1fe   :  { %576 = vst.msk [vmem:[#allocation5 + $0x2] ss:$8 sm:$0x3] %vm1565_vm0, %v573_v4  ;;  %664 = vmatprep.subr.bf16.mxu0 %v2656_v23  ;;  %705 = vmatprep.subr.bf16.mxu1 %v2657_v18  ;;  %v2671_v4 = vld [vmem:[#allocation82_spill] sm:$0xff]  ;;  %v2674_v23 = vld [vmem:[#allocation85_spill] sm:$0xff] }
 0x1ff   :  { %v2675_v18 = vld [vmem:[#allocation86_spill] sm:$0xff] }
 0x200   :  { %665 = vmatpush1.bf16.msra.mxu0 %v1812_v27  ;;  %706 = vmatpush1.bf16.msra.mxu1 %v2658_v62  ;;  %v2668_v27 = vld [vmem:[#allocation79_spill] sm:$0xff] }
 0x201   :  { %666 = vmatprep.subr.bf16.mxu0 %v2659_v7  ;;  %707 = vmatprep.subr.bf16.mxu1 %v2660_v20  ;;  %v2676_v62 = vld [vmem:[#allocation87_spill] sm:$0xff]  ;;  %v2677_v7 = vld [vmem:[#allocation88_spill] sm:$0xff]  ;;  %v2678_v20 = vld [vmem:[#allocation89_spill] sm:$0xff] }
 0x204   :  { %667 = vmatpush1.bf16.msra.mxu0 %v2661_v8  ;;  %708 = vmatpush1.bf16.msra.mxu1 %v2662_v21 }
 0x205   :  { %668 = vmatprep.subr.bf16.mxu0 %v2663_v19  ;;  %709 = vmatprep.subr.bf16.mxu1 %v2664_v3 }
 0x208   :  { %669 = vmatpush1.bf16.msra.mxu0 %v2665_v11  ;;  %710 = vmatpush1.bf16.msra.mxu1 %v2666_v5 }
 0x209   :  { %670 = vmatprep.subr.bf16.mxu0 %v2667_v12  ;;  %711 = vmatprep.subr.bf16.mxu1 %v2668_v27  ;;  %v2679_v27 = vld [vmem:[#allocation90_spill] sm:$0xff] }
 0x20c   :  { %671 = vmatpush1.bf16.msra.mxu0 %v2669_v9  ;;  %712 = vmatpush1.bf16.msra.mxu1 %v2670_v2  ;;  %v2680_v9 = vld [vmem:[#allocation91_spill] sm:$0xff]  ;;  %v2681_v2 = vld [vmem:[#allocation92_spill] sm:$0xff] }
 0x20d   :  { %672 = vmatprep.subr.bf16.mxu0 %v2671_v4  ;;  %713 = vmatprep.subr.bf16.mxu1 %v2672_v63  ;;  %v2682_v4 = vld [vmem:[#allocation93_spill] sm:$0xff]  ;;  %v2683_v63 = vld [vmem:[#allocation94_spill] sm:$0xff] }
 0x210   :  { %673 = vmatpush1.bf16.msra.mxu0 %v2673_v13  ;;  %714 = vmatpush1.bf16.msra.mxu1 %v2674_v23  ;;  %v2684_v13 = vld [vmem:[#allocation95_spill] sm:$0xff]  ;;  %v2685_v23 = vld [vmem:[#allocation96_spill] sm:$0xff] }
 0x211   :  { %674 = vmatprep.subr.bf16.mxu0 %v2675_v18  ;;  %715 = vmatprep.subr.bf16.mxu1 %v2676_v62  ;;  %v2686_v18 = vld [vmem:[#allocation97_spill] sm:$0xff]  ;;  %v2687_v62 = vld [vmem:[#allocation98_spill] sm:$0xff] }
 0x214   :  { %675 = vmatpush1.bf16.msra.mxu0 %v2677_v7  ;;  %716 = vmatpush1.bf16.msra.mxu1 %v2678_v20  ;;  %v2688_v7 = vld [vmem:[#allocation99_spill] sm:$0xff]  ;;  %v2689_v20 = vld [vmem:[#allocation100_spill] sm:$0xff] }
 0x215   :  { %676 = vmatprep.subr.bf16.mxu0 %v2679_v27  ;;  %717 = vmatprep.subr.bf16.mxu1 %v2680_v9  ;;  %v2690_v27 = vld [vmem:[#allocation101_spill] sm:$0xff]  ;;  %v2691_v9 = vld [vmem:[#allocation102_spill] sm:$0xff] }
 0x218   :  { %677 = vmatpush1.bf16.msra.mxu0 %v2681_v2  ;;  %718 = vmatpush1.bf16.msra.mxu1 %v2682_v4  ;;  %v2692_v2 = vld [vmem:[#allocation103_spill] sm:$0xff]  ;;  %v2693_v4 = vld [vmem:[#allocation104_spill] sm:$0xff] }
 0x219   :  { %678 = vmatprep.subr.bf16.mxu0 %v2683_v63  ;;  %719 = vmatprep.subr.bf16.mxu1 %v2684_v13  ;;  %v2694_v63 = vld [vmem:[#allocation105_spill] sm:$0xff]  ;;  %v2695_v13 = vld [vmem:[#allocation106_spill] sm:$0xff] }
 0x21c   :  { %679 = vmatpush1.bf16.msra.mxu0 %v2685_v23  ;;  %720 = vmatpush1.bf16.msra.mxu1 %v2686_v18  ;;  %v2696_v23 = vld [vmem:[#allocation107_spill] sm:$0xff]  ;;  %v2697_v18 = vld [vmem:[#allocation108_spill] sm:$0xff] }
 0x21d   :  { %680 = vmatprep.subr.bf16.mxu0 %v2687_v62  ;;  %721 = vmatprep.subr.bf16.mxu1 %v2688_v7  ;;  %v2698_v62 = vld [vmem:[#allocation109_spill] sm:$0xff]  ;;  %v2699_v7 = vld [vmem:[#allocation110_spill] sm:$0xff] }
 0x220   :  { %681 = vmatpush1.bf16.msra.mxu0 %v2689_v20  ;;  %722 = vmatpush1.bf16.msra.mxu1 %v2690_v27  ;;  %v2700_v20 = vld [vmem:[#allocation111_spill] sm:$0xff]  ;;  %v2701_v27 = vld [vmem:[#allocation112_spill] sm:$0xff] }
 0x221   :  { %682 = vmatprep.subr.bf16.mxu0 %v2691_v9  ;;  %723 = vmatprep.subr.bf16.mxu1 %v2692_v2  ;;  %v2702_v9 = vld [vmem:[#allocation113_spill] sm:$0xff]  ;;  %v2703_v2 = vld [vmem:[#allocation114_spill] sm:$0xff] }
 0x224   :  { %683 = vmatpush1.bf16.msra.mxu0 %v2693_v4  ;;  %724 = vmatpush1.bf16.msra.mxu1 %v2694_v63  ;;  %v2704_v4 = vld [vmem:[#allocation115_spill] sm:$0xff] }
 0x225   :  { %684 = vmatprep.subr.bf16.mxu0 %v2695_v13  ;;  %725 = vmatprep.subr.bf16.mxu1 %v2696_v23  ;;  %v2705_v13 = vld [vmem:[#allocation116_spill] sm:$0xff]  ;;  %v2706_v23 = vld [vmem:[#allocation117_spill] sm:$0xff] }
 0x228   :  { %685 = vmatpush1.bf16.msra.mxu0 %v2697_v18  ;;  %726 = vmatpush1.bf16.msra.mxu1 %v2698_v62 }
 0x229   :  { %686 = vmatprep.subr.bf16.mxu0 %v2699_v7  ;;  %727 = vmatprep.subr.bf16.mxu1 %v2700_v20 }
 0x22c   :  { %687 = vmatpush1.bf16.msra.mxu0 %v2701_v27  ;;  %728 = vmatpush1.bf16.msra.mxu1 %v2702_v9 }
 0x22d   :  { %688 = vmatprep.subr.bf16.mxu0 %v2703_v2  ;;  %729 = vmatprep.subr.bf16.mxu1 %v2704_v4 }
 0x230   :  { %689 = vmatpush1.bf16.msra.mxu0 %v1958_v29  ;;  %730 = vmatpush1.bf16.msra.mxu1 %v2705_v13 }
 0x231   :  { %690 = vmatprep.subr.bf16.mxu0 %v2706_v23  ;;  %731 = vmatprep.subr.bf16.mxu1 %v1964_v33 }
 0x234   :  { %691 = vmatpush1.bf16.msra.mxu0 %v1970_v28  ;;  %732 = vmatpush1.bf16.msra.mxu1 %v1972_v26 }
 0x235   :  { %692 = vmatprep.subr.bf16.mxu0 %v1974_v24  ;;  %733 = vmatprep.subr.bf16.mxu1 %v1976_v22 }
 0x238   :  { %693 = vmatpush1.bf16.msra.mxu0 %v1982_v1  ;;  %734 = vmatpush1.bf16.msra.mxu1 %v1984_v25 }
 0x239   :  { %815 = vmatprep.subr.bf16.mxu0 %v1589_v30  ;;  %856 = vmatprep.subr.bf16.mxu1 %v1591_v31  ;;  %v2707_v30 = vld [vmem:[#allocation29_spill] sm:$0xff]  ;;  %v2708_v31 = vld [vmem:[#allocation30_spill] sm:$0xff] }
 0x23b   :  { %695 = vmatmul.mubr.bf16.vlgmr.msra.gmra.mrb[12].mxu0 %v2109_v15  ;;  %736 = vmatmul.mubr.bf16.vlgmr.msra.gmra.mrb[12].mxu1 %v2109_v15  ;;  %v2738_v15 = vld [vmem:[#allocation61_spill] sm:$0xff] }
 0x23c   :  { %816 = vmatpush1.bf16.msra.mxu0 %v1593_v32  ;;  %857 = vmatpush1.bf16.msra.mxu1 %v1599_v34  ;;  %v2709_v32 = vld [vmem:[#allocation31_spill] sm:$0xff]  ;;  %v2710_v34 = vld [vmem:[#allocation32_spill] sm:$0xff] }
 0x23d   :  { %817 = vmatprep.subr.bf16.mxu0 %v1601_v35  ;;  %858 = vmatprep.subr.bf16.mxu1 %v1603_v36  ;;  %v2711_v35 = vld [vmem:[#allocation33_spill] sm:$0xff]  ;;  %v2712_v36 = vld [vmem:[#allocation34_spill] sm:$0xff] }
 0x240   :  { %818 = vmatpush1.bf16.msra.mxu0 %v1609_v37  ;;  %859 = vmatpush1.bf16.msra.mxu1 %v1611_v38  ;;  %v2713_v37 = vld [vmem:[#allocation35_spill] sm:$0xff]  ;;  %v2714_v38 = vld [vmem:[#allocation36_spill] sm:$0xff] }
 0x241   :  { %819 = vmatprep.subr.bf16.mxu0 %v1613_v39  ;;  %860 = vmatprep.subr.bf16.mxu1 %v1615_v40  ;;  %v2715_v39 = vld [vmem:[#allocation37_spill] sm:$0xff]  ;;  %v2716_v40 = vld [vmem:[#allocation38_spill] sm:$0xff] }
 0x244   :  { %820 = vmatpush1.bf16.msra.mxu0 %v1623_v41  ;;  %861 = vmatpush1.bf16.msra.mxu1 %v1625_v42  ;;  %v2717_v41 = vld [vmem:[#allocation39_spill] sm:$0xff]  ;;  %v2718_v42 = vld [vmem:[#allocation40_spill] sm:$0xff] }
 0x245   :  { %821 = vmatprep.subr.bf16.mxu0 %v1627_v43  ;;  %862 = vmatprep.subr.bf16.mxu1 %v1629_v44  ;;  %v2719_v43 = vld [vmem:[#allocation41_spill] sm:$0xff]  ;;  %v2720_v44 = vld [vmem:[#allocation42_spill] sm:$0xff] }
 0x248   :  { %822 = vmatpush1.bf16.msra.mxu0 %v1635_v45  ;;  %863 = vmatpush1.bf16.msra.mxu1 %v1637_v46  ;;  %v2721_v45 = vld [vmem:[#allocation43_spill] sm:$0xff]  ;;  %v2722_v46 = vld [vmem:[#allocation44_spill] sm:$0xff] }
 0x249   :  { %823 = vmatprep.subr.bf16.mxu0 %v1639_v47  ;;  %864 = vmatprep.subr.bf16.mxu1 %v1641_v48  ;;  %v2723_v47 = vld [vmem:[#allocation45_spill] sm:$0xff]  ;;  %v2724_v48 = vld [vmem:[#allocation46_spill] sm:$0xff] }
 0x24c   :  { %824 = vmatpush1.bf16.msra.mxu0 %v1647_v49  ;;  %865 = vmatpush1.bf16.msra.mxu1 %v1649_v50  ;;  %v2725_v49 = vld [vmem:[#allocation47_spill] sm:$0xff]  ;;  %v2726_v50 = vld [vmem:[#allocation48_spill] sm:$0xff] }
 0x24d   :  { %825 = vmatprep.subr.bf16.mxu0 %v1651_v51  ;;  %866 = vmatprep.subr.bf16.mxu1 %v1653_v52  ;;  %v2727_v51 = vld [vmem:[#allocation49_spill] sm:$0xff]  ;;  %v2728_v52 = vld [vmem:[#allocation50_spill] sm:$0xff] }
 0x250   :  { %826 = vmatpush1.bf16.msra.mxu0 %v1659_v53  ;;  %867 = vmatpush1.bf16.msra.mxu1 %v1661_v54  ;;  %v2729_v53 = vld [vmem:[#allocation51_spill] sm:$0xff]  ;;  %v2730_v54 = vld [vmem:[#allocation52_spill] sm:$0xff] }
 0x251   :  { %827 = vmatprep.subr.bf16.mxu0 %v1663_v55  ;;  %868 = vmatprep.subr.bf16.mxu1 %v1665_v56  ;;  %v2731_v55 = vld [vmem:[#allocation53_spill] sm:$0xff]  ;;  %v2732_v56 = vld [vmem:[#allocation54_spill] sm:$0xff] }
 0x254   :  { %828 = vmatpush1.bf16.msra.mxu0 %v1671_v57  ;;  %869 = vmatpush1.bf16.msra.mxu1 %v1673_v58  ;;  %v2733_v57 = vld [vmem:[#allocation55_spill] sm:$0xff]  ;;  %v2734_v58 = vld [vmem:[#allocation57_spill] sm:$0xff] }
 0x255   :  { %829 = vmatprep.subr.bf16.mxu0 %v1675_v59  ;;  %870 = vmatprep.subr.bf16.mxu1 %v1677_v60  ;;  %v2735_v59 = vld [vmem:[#allocation58_spill] sm:$0xff]  ;;  %v2736_v60 = vld [vmem:[#allocation59_spill] sm:$0xff] }
 0x258   :  { %830 = vmatpush1.bf16.msra.mxu0 %v1683_v61  ;;  %871 = vmatpush1.bf16.msra.mxu1 %v2707_v30  ;;  %v2737_v61 = vld [vmem:[#allocation60_spill] sm:$0xff]  ;;  %v2739_v30 = vld [vmem:[#allocation62_spill] sm:$0xff] }
 0x259   :  { %831 = vmatprep.subr.bf16.mxu0 %v2708_v31  ;;  %872 = vmatprep.subr.bf16.mxu1 %v2709_v32  ;;  %v2740_v31 = vld [vmem:[#allocation63_spill] sm:$0xff]  ;;  %v2741_v32 = vld [vmem:[#allocation64_spill] sm:$0xff] }
 0x25c   :  { %832 = vmatpush1.bf16.msra.mxu0 %v2710_v34  ;;  %873 = vmatpush1.bf16.msra.mxu1 %v2711_v35 }
 0x25d   :  { %833 = vmatprep.subr.bf16.mxu0 %v2712_v36  ;;  %874 = vmatprep.subr.bf16.mxu1 %v2713_v37 }
 0x260   :  { %834 = vmatpush1.bf16.msra.mxu0 %v2714_v38  ;;  %875 = vmatpush1.bf16.msra.mxu1 %v2715_v39 }
 0x261   :  { %835 = vmatprep.subr.bf16.mxu0 %v2716_v40  ;;  %876 = vmatprep.subr.bf16.mxu1 %v2717_v41 }
 0x264   :  { %836 = vmatpush1.bf16.msra.mxu0 %v2718_v42  ;;  %877 = vmatpush1.bf16.msra.mxu1 %v2719_v43  ;;  %v2742_v42 = vld [vmem:[#allocation25_spill] sm:$0xff] }
 0x265   :  { %837 = vmatprep.subr.bf16.mxu0 %v2720_v44  ;;  %878 = vmatprep.subr.bf16.mxu1 %v2721_v45  ;;  %v2743_v44 = vld [vmem:[#allocation27_spill] sm:$0xff] }
 0x268   :  { %838 = vmatpush1.bf16.msra.mxu0 %v2722_v46  ;;  %879 = vmatpush1.bf16.msra.mxu1 %v2723_v47  ;;  %v2744_v46 = vld [vmem:[#allocation56_spill] sm:$0xff] }
 0x269   :  { %839 = vmatprep.subr.bf16.mxu0 %v2724_v48  ;;  %880 = vmatprep.subr.bf16.mxu1 %v2725_v49  ;;  %v2745_v48 = vld [vmem:[#allocation26_spill] sm:$0xff] }
 0x26c   :  { %840 = vmatpush1.bf16.msra.mxu0 %v2726_v50  ;;  %881 = vmatpush1.bf16.msra.mxu1 %v2727_v51 }
 0x26d   :  { %841 = vmatprep.subr.bf16.mxu0 %v2728_v52  ;;  %882 = vmatprep.subr.bf16.mxu1 %v2729_v53 }
 0x270   :  { %842 = vmatpush1.bf16.msra.mxu0 %v2730_v54  ;;  %883 = vmatpush1.bf16.msra.mxu1 %v2731_v55 }
 0x271   :  { %843 = vmatprep.subr.bf16.mxu0 %v2732_v56  ;;  %884 = vmatprep.subr.bf16.mxu1 %v2733_v57 }
 0x274   :  { %844 = vmatpush1.bf16.msra.mxu0 %v2734_v58  ;;  %885 = vmatpush1.bf16.msra.mxu1 %v2735_v59 }
 0x275   :  { %845 = vmatprep.subr.bf16.mxu0 %v2736_v60  ;;  %886 = vmatprep.subr.bf16.mxu1 %v2737_v61 }
 0x278   :  { %846 = vmatpush1.bf16.msra.mxu0 %v2738_v15  ;;  %887 = vmatpush1.bf16.msra.mxu1 %v2739_v30 }
 0x279   :  { %897 = vmatprep.subr.bf16.mxu0 %v2740_v31  ;;  %938 = vmatprep.subr.bf16.mxu1 %v2741_v32  ;;  %v2746_v32 = vld [vmem:[#allocation28_spill] sm:$0xff] }
 0x2ce   :  { %v614_v34 = vpop.f32.mrb[8].mxu0  ;;  %v655_v35 = vpop.f32.mrb[8].mxu1 }
 0x2cf   :  { %v616_v36 = vpop.f32.mrb[9].mxu0  ;;  %v657_v37 = vpop.f32.mrb[9].mxu1  ;;  %v615_v43 = vadd.f32 %v614_v34, %v2742_v42  ;;  %v656_v45 = vadd.f32 %v655_v35, %v2743_v44 }
 0x2d0   :  { %v618_v38 = vpop.f32.mrb[10].mxu0  ;;  %v659_v39 = vpop.f32.mrb[10].mxu1  ;;  %v617_v47 = vadd.f32 %v616_v36, %v2744_v46  ;;  %v658_v49 = vadd.f32 %v657_v37, %v2745_v48  ;;  %v2747_v37 = vld [vmem:[#allocation118_spill] sm:$0xff] }
 0x2d1   :  { %v619_v40 = vpop.f32.mrb[11].mxu0  ;;  %v660_v41 = vpop.f32.mrb[11].mxu1  ;;  %v1165_v50 = vmul.f32 -1.442695, %v615_v43  ;;  %v1167_v51 = vmul.f32 -1.442695, %v656_v45 }
 0x2d2   :  { %v1166_v52 = vmul.f32 -1.442695, %v617_v47  ;;  %v1168_v53 = vmul.f32 -1.442695, %v658_v49 }
 0x2d3   :  { %1267 = vpow2.f32 %v1165_v50 }
 0x2d4   :  { %1269 = vpow2.f32 %v1167_v51 }
 0x2d5   :  { %1271 = vpow2.f32 %v1166_v52 }
 0x2d6   :  { %1273 = vpow2.f32 %v1168_v53 }
 0x2dd   :  { %v1268_v54 = vpop.eup %1267 }
 0x2de   :  { %v1270_v55 = vpop.eup %1269  ;;  %v750_v58 = vadd.f32 1.0, %v1268_v54 }
 0x2df   :  { %v1272_v56 = vpop.eup %1271  ;;  %v762_v59 = vadd.f32 1.0, %v1270_v55 }
 0x2e0   :  { %v1274_v57 = vpop.eup %1273  ;;  %v751_v60 = vadd.f32 1.0, %v1272_v56  ;;  %1275 = vrcp.f32 %v750_v58 }
 0x2e1   :  { %v763_v61 = vadd.f32 1.0, %v1274_v57  ;;  %1277 = vrcp.f32 %v762_v59 }
 0x2e2   :  { %1279 = vrcp.f32 %v751_v60 }
 0x2e3   :  { %1281 = vrcp.f32 %v763_v61 }
 0x2ea   :  { %v1276_v50 = vpop.eup %1275 }
 0x2eb   :  { %v1278_v51 = vpop.eup %1277 }
 0x2ec   :  { %v1280_v52 = vpop.eup %1279  ;;  %v782_v56 = vmul.f32 %v1278_v51, %v2100_v0  ;;  %v1333_v51 = vld [vmem:[#allocation2 + $0x68] sm:$0xff] }
 0x2ed   :  { %v1282_v53 = vpop.eup %1281 }
 0x2ee   :  { %v783_v59 = vmul.f32 %v1282_v53, %v2102_v16  ;;  %v1335_v53 = vld [vmem:[#allocation2 + $0x60] sm:$0xff] }
 0x30e   :  { %v696_v15 = vpop.f32.mrb[12].mxu0  ;;  %v737_v30 = vpop.f32.mrb[12].mxu1 }
 0x30f   :  { %v697_v31 = vadd.f32 %v696_v15, %v2083_v17  ;;  %v738_v34 = vadd.f32 %v737_v30, %v2746_v32  ;;  %v698_v35 = vpop.f32.mrb[13].mxu0  ;;  %v739_v36 = vpop.f32.mrb[13].mxu1 }
 0x310   :  { %v699_v38 = vadd.f32 %v698_v35, %v2747_v37  ;;  %v740_v39 = vadd.f32 %v739_v36, %v2092_v6  ;;  %v700_v40 = vpop.f32.mrb[14].mxu0  ;;  %v741_v41 = vpop.f32.mrb[14].mxu1 }
 0x311   :  { %1283 = vtanh.f32 %v697_v31  ;;  %v1169_v43 = vmul.f32 -1.442695, %v738_v34  ;;  %v701_v45 = vpop.f32.mrb[15].mxu0  ;;  %v742_v47 = vpop.f32.mrb[15].mxu1 }
 0x312   :  { %1285 = vtanh.f32 %v699_v38  ;;  %v1170_v49 = vmul.f32 -1.442695, %v740_v39 }
 0x313   :  { %1287 = vpow2.f32 %v1169_v43 }
 0x314   :  { %1289 = vpow2.f32 %v1170_v49  ;;  %v1331_v49 = vld [vmem:[#allocation2 + $0x20] sm:$0xff] }
 0x31b   :  { %v1284_v54 = vpop.eup %1283 }
 0x31c   :  { %v1286_v55 = vpop.eup %1285  ;;  %v784_v57 = vmul.f32 %v1284_v54, %v1276_v50  ;;  %v1332_v50 = vld [vmem:[#allocation2 + $0x30] sm:$0xff] }
 0x31d   :  { %v1288_v58 = vpop.eup %1287  ;;  %v785_v60 = vmul.f32 %v1286_v55, %v1280_v52  ;;  %v1334_v52 = vld [vmem:[#allocation2 + $0x78] sm:$0xff]  ;;  %v1336_v54 = vld [vmem:[#allocation2 + $0x70] sm:$0xff]  ;;  %v1337_v55 = vld [vmem:[#allocation2 + $0xa8] sm:$0xff] }
 0x31e   :  { %v1290_v61 = vpop.eup %1289  ;;  %v2257_v15 = vadd.f32 %v784_v57, %v782_v56  ;;  %v776_v30 = vadd.f32 1.0, %v1288_v58  ;;  %v1338_v56 = vld [vmem:[#allocation2 + $0xb8] sm:$0xff]  ;;  %v2748_v57 = vld [vmem:[#allocation79_spill] sm:$0xff]  ;;  %v2749_v58 = vld [vmem:[#allocation80_spill] sm:$0xff] }
 0x31f   :  { %v2259_v31 = vadd.f32 %v785_v60, %v783_v59  ;;  %v777_v34 = vadd.f32 1.0, %v1290_v61  ;;  %v2750_v59 = vld [vmem:[#allocation81_spill] sm:$0xff]  ;;  %v2751_v60 = vld [vmem:[#allocation82_spill] sm:$0xff] }
 0x320   :  { %1291 = vtanh.f32 %v2257_v15  ;;  %v2759_v61 = vld [vmem:[#allocation90_spill] sm:$0xff] }
 0x321   :  { %1293 = vrcp.f32 %v776_v30  ;;  %v2760_v30 = vld [vmem:[#allocation91_spill] sm:$0xff] }
 0x322   :  { %1295 = vtanh.f32 %v2259_v31 }
 0x323   :  { %1297 = vrcp.f32 %v777_v34  ;;  %v2761_v34 = vld [vmem:[#allocation92_spill] sm:$0xff] }
 0x32a   :  { %v1292_v35 = vpop.eup %1291 }
 0x32b   :  { %v1294_v0 = vpop.eup %1293 }
 0x32c   :  { %v1296_v36 = vpop.eup %1295  ;;  %v790_v38 = vmul.f32 %v1294_v0, %v1292_v35  ;;  %v2762_v35 = vld [vmem:[#allocation93_spill] sm:$0xff]  ;;  %v2763_v0 = vld [vmem:[#allocation94_spill] sm:$0xff] }
 0x32d   :  { %v1298_v39 = vpop.eup %1297 }
 0x32e   :  { %v791_v16 = vmul.f32 %v1298_v39, %v1296_v36  ;;  %v2263_v43 = vpack.c.bf16 %v790_v38, %v790_v38  ;;  %v2764_v36 = vld [vmem:[#allocation95_spill] sm:$0xff]  ;;  %v2766_v39 = vld [vmem:[#allocation97_spill] sm:$0xff] }
 0x330   :  { %v814_v40 = vpack.c.bf16 %v791_v16, %v791_v16  ;;  %v794_v41 = vcombine.low %v790_v38, %v791_v16  ;;  %v2765_v38 = vld [vmem:[#allocation96_spill] sm:$0xff]  ;;  %v2767_v16 = vld [vmem:[#allocation98_spill] sm:$0xff] }
 0x332   :  { %847 = vmatprep.mubr.bf16.mxu0 %v814_v40  ;;  %888 = vmatprep.mubr.bf16.mxu1 %v814_v40  ;;  %v801_v45 = vrot.slane %v794_v41, %v2107_v10  ;;  %v2769_v41 = vld [vmem:[#allocation100_spill] sm:$0xff] }
 0x333   :  { %848 = vmatmul.mubr.bf16.vlgmr.msra.gmra.mrb[16].mxu0 %v2263_v43  ;;  %889 = vmatmul.mubr.bf16.vlgmr.msra.gmra.mrb[16].mxu1 %v2263_v43 }
 0x334   :  { %v808_v47 = vrot.slane %v801_v45, %v2107_v10  ;;  %898 = vmatpush1.bf16.msra.mxu0 %v1331_v49  ;;  %939 = vmatpush1.bf16.msra.mxu1 %v1332_v50  ;;  %v2770_v45 = vld [vmem:[#allocation101_spill] sm:$0xff]  ;;  %v2772_v49 = vld [vmem:[#allocation103_spill] sm:$0xff]  ;;  %v2773_v50 = vld [vmem:[#allocation104_spill] sm:$0xff] }
 0x335   :  { %929 = vmatprep.mubr.bf16.mxu0 %v814_v40  ;;  %970 = vmatprep.mubr.bf16.mxu1 %v814_v40  ;;  %v2768_v40 = vld [vmem:[#allocation99_spill] sm:$0xff] }
 0x336   :  { %811 = vst.msk [vmem:[#allocation5 + $0x3] ss:$8 sm:$0x3] %vm1565_vm0, %v808_v47  ;;  %899 = vmatprep.subr.bf16.mxu0 %v1333_v51  ;;  %940 = vmatprep.subr.bf16.mxu1 %v1334_v52  ;;  %v2771_v47 = vld [vmem:[#allocation102_spill] sm:$0xff]  ;;  %v2775_v52 = vld [vmem:[#allocation107_spill] sm:$0xff] }
 0x337   :  { %v2774_v51 = vld [vmem:[#allocation106_spill] sm:$0xff] }
 0x338   :  { %900 = vmatpush1.bf16.msra.mxu0 %v1335_v53  ;;  %941 = vmatpush1.bf16.msra.mxu1 %v1336_v54 }
 0x339   :  { %901 = vmatprep.subr.bf16.mxu0 %v1337_v55  ;;  %942 = vmatprep.subr.bf16.mxu1 %v1338_v56 }
 0x33c   :  { %902 = vmatpush1.bf16.msra.mxu0 %v2661_v8  ;;  %943 = vmatpush1.bf16.msra.mxu1 %v2662_v21  ;;  %v2752_v8 = vld [vmem:[#allocation83_spill] sm:$0xff]  ;;  %v2753_v21 = vld [vmem:[#allocation84_spill] sm:$0xff] }
 0x33d   :  { %903 = vmatprep.subr.bf16.mxu0 %v2663_v19  ;;  %944 = vmatprep.subr.bf16.mxu1 %v2664_v3  ;;  %v2754_v19 = vld [vmem:[#allocation85_spill] sm:$0xff]  ;;  %v2755_v3 = vld [vmem:[#allocation86_spill] sm:$0xff] }
 0x340   :  { %904 = vmatpush1.bf16.msra.mxu0 %v2665_v11  ;;  %945 = vmatpush1.bf16.msra.mxu1 %v2666_v5  ;;  %v2756_v11 = vld [vmem:[#allocation87_spill] sm:$0xff]  ;;  %v2757_v5 = vld [vmem:[#allocation88_spill] sm:$0xff] }
 0x341   :  { %905 = vmatprep.subr.bf16.mxu0 %v2667_v12  ;;  %946 = vmatprep.subr.bf16.mxu1 %v2748_v57  ;;  %v2758_v12 = vld [vmem:[#allocation89_spill] sm:$0xff] }
 0x344   :  { %906 = vmatpush1.bf16.msra.mxu0 %v2749_v58  ;;  %947 = vmatpush1.bf16.msra.mxu1 %v2750_v59 }
 0x345   :  { %907 = vmatprep.subr.bf16.mxu0 %v2751_v60  ;;  %948 = vmatprep.subr.bf16.mxu1 %v2752_v8 }
 0x348   :  { %908 = vmatpush1.bf16.msra.mxu0 %v2753_v21  ;;  %949 = vmatpush1.bf16.msra.mxu1 %v2754_v19 }
 0x349   :  { %909 = vmatprep.subr.bf16.mxu0 %v2755_v3  ;;  %950 = vmatprep.subr.bf16.mxu1 %v2756_v11 }
 0x34c   :  { %910 = vmatpush1.bf16.msra.mxu0 %v2757_v5  ;;  %951 = vmatpush1.bf16.msra.mxu1 %v2758_v12 }
 0x34d   :  { %911 = vmatprep.subr.bf16.mxu0 %v2759_v61  ;;  %952 = vmatprep.subr.bf16.mxu1 %v2760_v30 }
 0x350   :  { %912 = vmatpush1.bf16.msra.mxu0 %v2761_v34  ;;  %953 = vmatpush1.bf16.msra.mxu1 %v2762_v35 }
 0x351   :  { %913 = vmatprep.subr.bf16.mxu0 %v2763_v0  ;;  %954 = vmatprep.subr.bf16.mxu1 %v2764_v36 }
 0x354   :  { %914 = vmatpush1.bf16.msra.mxu0 %v2765_v38  ;;  %955 = vmatpush1.bf16.msra.mxu1 %v2766_v39 }
 0x355   :  { %915 = vmatprep.subr.bf16.mxu0 %v2767_v16  ;;  %956 = vmatprep.subr.bf16.mxu1 %v2768_v40 }
 0x358   :  { %916 = vmatpush1.bf16.msra.mxu0 %v2769_v41  ;;  %957 = vmatpush1.bf16.msra.mxu1 %v2770_v45 }
 0x359   :  { %917 = vmatprep.subr.bf16.mxu0 %v2771_v47  ;;  %958 = vmatprep.subr.bf16.mxu1 %v2772_v49 }
 0x35c   :  { %918 = vmatpush1.bf16.msra.mxu0 %v2773_v50  ;;  %959 = vmatpush1.bf16.msra.mxu1 %v2694_v63 }
 0x35d   :  { %919 = vmatprep.subr.bf16.mxu0 %v2774_v51  ;;  %960 = vmatprep.subr.bf16.mxu1 %v2775_v52 }
 0x360   :  { %920 = vmatpush1.bf16.msra.mxu0 %v2697_v18  ;;  %961 = vmatpush1.bf16.msra.mxu1 %v2698_v62 }
 0x361   :  { %921 = vmatprep.subr.bf16.mxu0 %v2699_v7  ;;  %962 = vmatprep.subr.bf16.mxu1 %v2700_v20 }
 0x364   :  { %922 = vmatpush1.bf16.msra.mxu0 %v2701_v27  ;;  %963 = vmatpush1.bf16.msra.mxu1 %v2702_v9 }
 0x365   :  { %923 = vmatprep.subr.bf16.mxu0 %v2703_v2  ;;  %964 = vmatprep.subr.bf16.mxu1 %v2704_v4 }
 0x368   :  { %924 = vmatpush1.bf16.msra.mxu0 %v1958_v29  ;;  %965 = vmatpush1.bf16.msra.mxu1 %v2705_v13 }
 0x369   :  { %925 = vmatprep.subr.bf16.mxu0 %v2706_v23  ;;  %966 = vmatprep.subr.bf16.mxu1 %v1964_v33 }
 0x36c   :  { %926 = vmatpush1.bf16.msra.mxu0 %v1970_v28  ;;  %967 = vmatpush1.bf16.msra.mxu1 %v1972_v26 }
 0x36d   :  { %927 = vmatprep.subr.bf16.mxu0 %v1974_v24  ;;  %968 = vmatprep.subr.bf16.mxu1 %v1976_v22 }
 0x370   :  { %928 = vmatpush1.bf16.msra.mxu0 %v1982_v1  ;;  %969 = vmatpush1.bf16.msra.mxu1 %v1984_v25 }
 0x373   :  { %930 = vmatmul.mubr.bf16.vlgmr.msra.gmra.mrb[20].mxu0 %v2263_v43  ;;  %971 = vmatmul.mubr.bf16.vlgmr.msra.gmra.mrb[20].mxu1 %v2263_v43 }
 0x406   :  { %v849_v29 = vpop.f32.mrb[16].mxu0  ;;  %v890_v27 = vpop.f32.mrb[16].mxu1 }
 0x407   :  { %v851_v9 = vpop.f32.mrb[17].mxu0  ;;  %v892_v33 = vpop.f32.mrb[17].mxu1  ;;  %v850_v24 = vadd.f32 %v849_v29, %v2742_v42  ;;  %v891_v22 = vadd.f32 %v890_v27, %v2743_v44 }
 0x408   :  { %v853_v2 = vpop.f32.mrb[18].mxu0  ;;  %v894_v28 = vpop.f32.mrb[18].mxu1  ;;  %v852_v1 = vadd.f32 %v851_v9, %v2744_v46  ;;  %v893_v25 = vadd.f32 %v892_v33, %v2745_v48 }
 0x409   :  { %v854_v4 = vpop.f32.mrb[19].mxu0  ;;  %v895_v26 = vpop.f32.mrb[19].mxu1  ;;  %v1171_v63 = vmul.f32 -1.442695, %v850_v24  ;;  %v1173_v13 = vmul.f32 -1.442695, %v891_v22 }
 0x40a   :  { %v1172_v23 = vmul.f32 -1.442695, %v852_v1  ;;  %v1174_v18 = vmul.f32 -1.442695, %v893_v25 }
 0x40b   :  { %1299 = vpow2.f32 %v1171_v63 }
 0x40c   :  { %1301 = vpow2.f32 %v1173_v13 }
 0x40d   :  { %1303 = vpow2.f32 %v1172_v23 }
 0x40e   :  { %1305 = vpow2.f32 %v1174_v18 }
 0x415   :  { %v1300_v62 = vpop.eup %1299 }
 0x416   :  { %v1302_v7 = vpop.eup %1301  ;;  %v985_v53 = vadd.f32 1.0, %v1300_v62 }
 0x417   :  { %v1304_v20 = vpop.eup %1303  ;;  %v997_v42 = vadd.f32 1.0, %v1302_v7 }
 0x418   :  { %v1306_v43 = vpop.eup %1305  ;;  %v986_v54 = vadd.f32 1.0, %v1304_v20  ;;  %1307 = vrcp.f32 %v985_v53 }
 0x419   :  { %v998_v44 = vadd.f32 1.0, %v1306_v43  ;;  %1309 = vrcp.f32 %v997_v42 }
 0x41a   :  { %1311 = vrcp.f32 %v986_v54 }
 0x41b   :  { %1313 = vrcp.f32 %v998_v44 }
 0x446   :  { %v931_v46 = vpop.f32.mrb[20].mxu0  ;;  %v972_v48 = vpop.f32.mrb[20].mxu1 }
 0x447   :  { %v932_v55 = vadd.f32 %v931_v46, %v2083_v17  ;;  %v973_v56 = vadd.f32 %v972_v48, %v2746_v32  ;;  %v933_v57 = vpop.f32.mrb[21].mxu0  ;;  %v974_v58 = vpop.f32.mrb[21].mxu1 }
 0x448   :  { %v934_v59 = vadd.f32 %v933_v57, %v2747_v37  ;;  %v975_v60 = vadd.f32 %v974_v58, %v2092_v6  ;;  %v935_v8 = vpop.f32.mrb[22].mxu0  ;;  %v976_v21 = vpop.f32.mrb[22].mxu1 }
 0x449   :  { %1315 = vtanh.f32 %v932_v55  ;;  %v1175_v19 = vmul.f32 -1.442695, %v973_v56  ;;  %v936_v3 = vpop.f32.mrb[23].mxu0  ;;  %v977_v11 = vpop.f32.mrb[23].mxu1 }
 0x44a   :  { %1317 = vtanh.f32 %v934_v59  ;;  %v1176_v5 = vmul.f32 -1.442695, %v975_v60  ;;  %v1308_v17 = vpop.eup %1307 }
 0x44b   :  { %1319 = vpow2.f32 %v1175_v19  ;;  %v1310_v12 = vpop.eup %1309 }
 0x44c   :  { %1321 = vpow2.f32 %v1176_v5  ;;  %v1312_v32 = vpop.eup %1311  ;;  %v1017_v37 = vmul.f32 %v1310_v12, %v2257_v15 }
 0x44d   :  { %v1314_v61 = vpop.eup %1313 }
 0x44e   :  { %v1018_v0 = vmul.f32 %v1314_v61, %v2259_v31 }
 0x453   :  { %v1316_v30 = vpop.eup %1315 }
 0x454   :  { %v1318_v34 = vpop.eup %1317  ;;  %v1019_v35 = vmul.f32 %v1316_v30, %v1308_v17 }
 0x455   :  { %v1320_v6 = vpop.eup %1319  ;;  %v1020_v36 = vmul.f32 %v1318_v34, %v1312_v32 }
 0x456   :  { %v1322_v38 = vpop.eup %1321  ;;  %v1021_v39 = vadd.f32 %v1019_v35, %v1017_v37  ;;  %v1011_v16 = vadd.f32 1.0, %v1320_v6 }
 0x457   :  { %v1022_v40 = vadd.f32 %v1020_v36, %v1018_v0  ;;  %v1012_v41 = vadd.f32 1.0, %v1322_v38 }
 0x458   :  { %1323 = vtanh.f32 %v1021_v39 }
 0x459   :  { %1325 = vrcp.f32 %v1011_v16 }
 0x45a   :  { %1327 = vtanh.f32 %v1022_v40 }
 0x45b   :  { %1329 = vrcp.f32 %v1012_v41 }
 0x462   :  { %v1324_v45 = vpop.eup %1323 }
 0x463   :  { %v1326_v47 = vpop.eup %1325 }
 0x464   :  { %v1328_v49 = vpop.eup %1327  ;;  %v1025_v50 = vmul.f32 %v1326_v47, %v1324_v45 }
 0x465   :  { %v1330_v51 = vpop.eup %1329 }
 0x466   :  { %v1026_v15 = vmul.f32 %v1330_v51, %v1328_v49 }
 0x468   :  { %v1029_v52 = vcombine.low %v1025_v50, %v1026_v15 }
 0x46a   :  { %v1036_v29 = vrot.slane %v1029_v52, %v2107_v10 }
 0x46c   :  { %v1043_v31 = vrot.slane %v1036_v29, %v2107_v10 }
 0x46e   :  { %1046 = vst.msk [vmem:[#allocation5 + $0x4] ss:$8 sm:$0x3] %vm1565_vm0, %v1043_v31 }
 0x46f   :  { %1457 = dma.done.wait [#allocation4 + $0x1], 2048 }
 0x470   :  { %1458 = vsyncadd [#allocation4 + $0x1], 4294965248  ;;  %v1063_v27 = vld [vmem:[#allocation3 + $0x40] sm:$0xff]  ;;  %v1064_v33 = vld [vmem:[#allocation3 + $0x48] sm:$0xff]  ;;  %v2776_v56 = vlaneseq  ;;  %s1477_s8 = smov [#allocation12]  }
 0x471   :  { %v1055_v9 = vld [vmem:[#allocation3] sm:$0xff]  ;;  %1180 = vmatprep.subr.bf16.mxu0 %v1063_v27  ;;  %v1056_v2 = vld [vmem:[#allocation3 + $0x8] sm:$0xff]  ;;  %v1065_v28 = vld [vmem:[#allocation3 + $0x50] sm:$0xff]  ;;  %s1131_s9 = sshll.u32 %s1477_s8, 4  ;;  %s1132_s9 = int_to_ptr.vmem [resolvable:$true] %s1131_s9 }
 0x472   :  { %1181 = vmatpush3.bf16.msra.mxu0 %v1055_v9  ;;  %v1057_v24 = vld [vmem:[#allocation3 + $0x10] sm:$0xff]  ;;  %v1066_v22 = vld [vmem:[#allocation3 + $0x58] sm:$0xff]  ;;  %v1067_v14 = vld [vmem:[#allocation3 + $0x60] sm:$0xff]  ;;  %v1119_v57 = vand.u32 127, %v2776_v56  ;;  %s1429_s10 = scalar_lea.vmem %s1132_s9, 128  ;;  %p1434_p5 = scmp.lt.s32.totalorder %s1132_s9, %s1132_s9 }
 0x473   :  { %1182 = vmatprep.subr.bf16.mxu0 %v1064_v33  ;;  %v1058_v10 = vld [vmem:[#allocation3 + $0x18] sm:$0xff]  ;;  %v1059_v1 = vld [vmem:[#allocation3 + $0x20] sm:$0xff]  ;;  %v1068_v25 = vld [vmem:[#allocation3 + $0x68] sm:$0xff]  ;;  %p1430_p4 = scmp.ne.s32.totalorder %s1132_s9, %s1429_s10  ;;  %p1435_p6 = scmp.lt.s32.totalorder %s1429_s10, %s1429_s10 }
 0x474   :  { %v1060_v63 = vld [vmem:[#allocation3 + $0x28] sm:$0xff]  ;;  %v1069_v13 = vld [vmem:[#allocation3 + $0x70] sm:$0xff]  ;;  %v1070_v18 = vld [vmem:[#allocation3 + $0x78] sm:$0xff]  ;;  %vm1120_vm1 = vcmp.ge.s32.totalorder %v1119_v57, 32 }
 0x475   :  { %v1052_v4 = vld [vmem:[#allocation5 + $0x8] sm:$0xff]  ;;  %v1061_v23 = vld [vmem:[#allocation3 + $0x30] sm:$0xff]  ;;  %v1051_v62 = vld [vmem:[#allocation5] sm:$0xff]  ;;  %p1436_p7 = por %p1435_p6, %p1434_p5 }
 0x476   :  { %1183 = vmatpush3.bf16.msra.mxu0 %v1056_v2  ;;  %v1054_v26 = vpack.c.bf16 %v1052_v4, %v1052_v4  ;;  %v1062_v7 = vld [vmem:[#allocation3 + $0x38] sm:$0xff]  ;;  %v1053_v20 = vpack.c.bf16 %v1051_v62, %v1051_v62  ;;  %v1177_v53 = vld [vmem:[%s2362_s5] ss:$0 sm:$0xff] }
 0x477   :  { %1184 = vmatprep.subr.bf16.mxu0 %v1065_v28  ;;  %p1437_p8 = pnand %p1436_p7, %p1430_p4 }
 0x478   :  { %1110 = vmatprep.mubr.bf16.mxu0 %v1054_v26 }
 0x47a   :  { %1185 = vmatpush3.bf16.msra.mxu0 %v1057_v24 }
 0x47b   :  { %1186 = vmatprep.subr.bf16.mxu0 %v1066_v22 }
 0x47e   :  { %1187 = vmatpush3.bf16.msra.mxu0 %v1058_v10 }
 0x47f   :  { %1188 = vmatprep.subr.bf16.mxu0 %v1067_v14 }
 0x482   :  { %1189 = vmatpush3.bf16.msra.mxu0 %v1059_v1 }
 0x483   :  { %1190 = vmatprep.subr.bf16.mxu0 %v1068_v25 }
 0x486   :  { %1191 = vmatpush3.bf16.msra.mxu0 %v1060_v63 }
 0x487   :  { %1192 = vmatprep.subr.bf16.mxu0 %v1069_v13 }
 0x48a   :  { %1193 = vmatpush3.bf16.msra.mxu0 %v1061_v23 }
 0x48b   :  { %1194 = vmatprep.subr.bf16.mxu0 %v1070_v18 }
 0x48e   :  { %1195 = vmatpush3.bf16.msra.mxu0 %v1062_v7 }
 0x491   :  { %1111 = vmatmul.mubr.bf16.vlgmr.msra.gmra.mrb[24].mxu0 %v1053_v20 }
 0x564   :  { %v1196_v43 = vpop.f32.mrb[24].mxu0 }
 0x565   :  { %v1197_v42 = vpop.f32.mrb[25].mxu0 }
 0x566   :  { %v1198_v54 = vadd.f32 %v1197_v42, %v1196_v43  ;;  %v1199_v44 = vpop.f32.mrb[26].mxu0 }
 0x567   :  { %v1200_v46 = vpop.f32.mrb[27].mxu0 }
 0x568   :  { %v1113_v48 = vadd.f32 %v1198_v54, %v1177_v53 }
 0x56a   :  { %v1121_v55 = vmul.f32 1.442695, %v1113_v48 }
 0x56c   :  { %1339 = vpow2.f32 %v1121_v55 }
 0x576   :  { %v1340_v58 = vpop.eup %1339 }
 0x577   :  { %v1123_v59 = vsel %vm1120_vm1, %v1340_v58, %v1113_v48 }
 0x578   :  { %1124 = vst [vmem:[#allocation12] sm:$0xff] %v1123_v59 }
 0x579   :  { %1440 = shalt.err (!%p1437_p8)
}
 0x57a   :  { %s1441_s12 = scalar_lea.hbm %s2363_s6, 128 }
 0x57b   :  { %p1442_p9 = scmp.ne.s32.totalorder %s2363_s6, %s1441_s12  ;;  %p1445_p10 = scmp.lt.u32.totalorder %s1441_s12, %s2363_s6 }
 0x57d   :  { %p1447_p11 = pnand %p1445_p10, %p1442_p9 }
 0x57f   :  { %1450 = shalt.err (!%p1447_p11)
}
 0x580   :  { %1134 = dma.vmem_to_hbm [thread:$0]  %s1132_s9, 128, %s2363_s6, [#allocation8]  }
 0x581   :  { %1459 = dma.done.wait [#allocation8], 128  }
 0x582   :  { %1460 = vsyncadd [#allocation8], 4294967168 }
 0x583   :  { %1138 = vsyncpa [#allocation7], 1 }
 0x584   :  { %1139 = vsyncpa [#allocation10], 1 }
 0x585   :  { %1140 = vsyncpa [#allocation8], 1 }
 0x586   :  { %1141 = vsyncmov [#allocation4] }
 0x589   :  { %s1142_s18 = vpop.sfrf %1141 }
 0x58a   :  { %p1178_p12 = scmp.ne.s32.totalorder %s1142_s18, 0 }
 0x58c   :  { %1146 = shalt.err (%p1178_p12)  }
 0x58d   :  { %1148 = vsyncmov [#allocation4 + $0x1] }
 0x590   :  { %s1149_s1 = vpop.sfrf %1148 }
 0x591   :  { %p1179_p13 = scmp.ne.s32.totalorder %s1149_s1, 0 }
 0x593   :  { %1153 = shalt.err (%p1179_p13)  }

</bundles_post_ra>
